<compile_context>
chip_gen: v6e
topology: v6e:2x2x1
jax: 0.10.0
libtpu: 0.0.40
codegen_flags: <defaults>
</compile_context>

<pallas_src>
import functools

import jax
import jax.numpy as jnp
from jax.experimental import pallas as pl
from jax.experimental.pallas import tpu as pltpu


# Scoped-VMEM budget: safe on v5e/v6e (128 MiB physical) and v7x (64 MiB).
# TODO(synk): re-derive spatial tiling (with halos) for very large H*W so a
# per-image slab always fits this budget.
VMEM_LIMIT_BYTES = 32 * 1024 * 1024


# ---------------------------------------------------------------------------
# Down path: LeakyReLU(0.2) fused with Conv2d(Cin -> ni, k=4, s=2, p=1).
#
# Parity decomposition: the padded input is split into 4 slabs
#   slab(di,dj)[u,v] = xpad[2u+di, 2v+dj]
# so each slab only needs a stride-1 2x2 tap window.  The slab axis is the
# reduction grid axis ("arbitrary"), accumulated in a VMEM f32 scratch.
# ---------------------------------------------------------------------------
def _down_kernel(xs_ref, w_ref, o_ref, acc_ref, *, ho, wo, neg_slope):
    s = pl.program_id(1)

    @pl.when(s == 0)
    def _init():
        acc_ref[...] = jnp.zeros_like(acc_ref)

    xa = xs_ref[0, 0]                                      # (Hs, Ws, Cin)
    xa = jnp.where(xa >= 0.0, xa, neg_slope * xa)          # activation once per element (f32, VPU)
    # In-VMEM patch assembly (no 16x HBM im2col): (ho*wo, 4*Cin)
    patches = jnp.concatenate(
        [xa[a:a + ho, b:b + wo, :] for a in (0, 1) for b in (0, 1)],
        axis=-1).reshape(ho * wo, -1)
    acc_ref[...] += jnp.dot(patches.astype(jnp.bfloat16),
                            w_ref[0].astype(jnp.bfloat16),
                            preferred_element_type=jnp.float32)

    @pl.when(s == pl.num_programs(1) - 1)
    def _finalize():
        o_ref[0] = acc_ref[...].reshape(ho, wo, -1)


def down_conv(xs, w_d, *, ho, wo, ni, neg_slope=0.2):
    n_slab, n, hs, ws, cin = xs.shape
    flops = 2 * n * ho * wo * (16 * cin) * ni
    bytes_accessed = 4 * (xs.size + w_d.size + n * ho * wo * ni)
    return pl.pallas_call(
        functools.partial(_down_kernel, ho=ho, wo=wo, neg_slope=neg_slope),
        out_shape=jax.ShapeDtypeStruct((n, ho, wo, ni), jnp.float32),
        grid_spec=pltpu.PrefetchScalarGridSpec(
            num_scalar_prefetch=0,
            grid=(n, n_slab),                               # batch (parallel), slab (reduction)
            in_specs=[
                pl.BlockSpec((1, 1, hs, ws, cin), lambda i, s: (s, i, 0, 0, 0)),
                pl.BlockSpec((1, 4 * cin, ni), lambda i, s: (s, 0, 0)),
            ],
            out_specs=pl.BlockSpec((1, ho, wo, ni), lambda i, s: (i, 0, 0, 0)),
            scratch_shapes=[pltpu.VMEM((ho * wo, ni), jnp.float32)],
        ),
        compiler_params=pltpu.CompilerParams(
            dimension_semantics=("parallel", "arbitrary"),
            vmem_limit_bytes=VMEM_LIMIT_BYTES),
        cost_estimate=pl.CostEstimate(flops=flops, transcendentals=0,
                                      bytes_accessed=bytes_accessed),
    )(xs, w_d)


# ---------------------------------------------------------------------------
# Up path: ReLU fused with ConvTranspose2d(ni -> nf, k=4, s=2, p=1), plus
# BatchNorm partial statistics emitted from the GEMM epilogue.
#
# Output-parity decomposition:
#   y[n, 2m+p, 2l+q, co] = sum_{a,b,ci} dpad[n, m+p+a, l+q+b, ci]
#                                     * w_up[ci, co, 3-p-2a, 3-q-2b]
# i.e. each of the 4 output parities is a stride-1 2x2-tap conv over padded d.
# ---------------------------------------------------------------------------
def _up_kernel(d_ref, w_ref, u_ref, st_ref, *, ho, wo, nf):
    dr = jnp.maximum(d_ref[0], 0.0)                        # ReLU once, (ho+2, wo+2, ni), f32
    psum = jnp.zeros((1, nf), jnp.float32)
    psq = jnp.zeros((1, nf), jnp.float32)
    for s in range(4):                                     # static unroll over output parities
        p, q = divmod(s, 2)
        patches = jnp.concatenate(
            [dr[p + a:p + a + ho, q + b:q + b + wo, :]
             for a in (0, 1) for b in (0, 1)],
            axis=-1).reshape(ho * wo, -1)                  # (ho*wo, 4*ni), VMEM only
        u = jnp.dot(patches.astype(jnp.bfloat16), w_ref[s].astype(jnp.bfloat16),
                    preferred_element_type=jnp.float32)    # (ho*wo, nf)
        u_ref[s, 0] = u.reshape(ho, wo, nf)
        psum = psum + jnp.sum(u, axis=0, keepdims=True)    # BN stats fused in epilogue
        psq = psq + jnp.sum(u * u, axis=0, keepdims=True)
    st_ref[0] = jnp.concatenate([psum, psq], axis=0)       # (2, nf) per-image partials


def up_conv_with_stats(dpad, w_u, *, ho, wo, nf):
    n, hp, wp, ni = dpad.shape
    flops = 2 * n * 4 * ho * wo * (4 * ni) * nf
    bytes_accessed = 4 * (dpad.size + w_u.size + 4 * n * ho * wo * nf + n * 2 * nf)
    return pl.pallas_call(
        functools.partial(_up_kernel, ho=ho, wo=wo, nf=nf),
        out_shape=(jax.ShapeDtypeStruct((4, n, ho, wo, nf), jnp.float32),
                   jax.ShapeDtypeStruct((n, 2, nf), jnp.float32)),
        grid_spec=pltpu.PrefetchScalarGridSpec(
            num_scalar_prefetch=0,
            grid=(n,),
            in_specs=[
                pl.BlockSpec((1, hp, wp, ni), lambda i: (i, 0, 0, 0)),
                pl.BlockSpec((4, 4 * ni, nf), lambda i: (0, 0, 0)),
            ],
            out_specs=(
                pl.BlockSpec((4, 1, ho, wo, nf), lambda i: (0, i, 0, 0, 0)),
                pl.BlockSpec((1, 2, nf), lambda i: (i, 0, 0)),
            ),
        ),
        compiler_params=pltpu.CompilerParams(
            dimension_semantics=("parallel",),
            vmem_limit_bytes=VMEM_LIMIT_BYTES),
        cost_estimate=pl.CostEstimate(flops=flops, transcendentals=0,
                                      bytes_accessed=bytes_accessed),
    )(dpad, w_u)


# ---------------------------------------------------------------------------
# UnetBlock (innermost) forward
# ---------------------------------------------------------------------------
def unet_block_innermost(x_nchw, w_down, w_up, eps=1e-5):
    """x_nchw: (N, nf, H, W); w_down: (ni, nf, 4, 4); w_up: (ni, nf, 4, 4)."""
    x = jnp.transpose(x_nchw, (0, 2, 3, 1)).astype(jnp.float32)        # NHWC
    n, h, w, cin = x.shape
    ni, nf = w_up.shape[0], w_up.shape[1]
    ho, wo = h // 2, w // 2

    # -- down: parity-split the padded input (no 16x im2col through HBM) ----
    xp = jnp.pad(x, ((0, 0), (1, 1), (1, 1), (0, 0)))
    xs = jnp.stack([xp[:, di::2, dj::2, :]
                    for di in (0, 1) for dj in (0, 1)])                 # (4, N, Hs, Ws, Cin)
    # per-slab tap-stacked weights: w_d[2*di+dj, (2a+b)*Cin + ci, co]
    w_d = jnp.stack([
        jnp.concatenate([w_down[:, :, 2 * a + di, 2 * b + dj].T
                         for a in (0, 1) for b in (0, 1)], axis=0)
        for di in (0, 1) for dj in (0, 1)]).astype(jnp.float32)         # (4, 4*Cin, ni)
    d = down_conv(xs, w_d, ho=ho, wo=wo, ni=ni)                          # (N, Ho, Wo, ni)

    # -- up: ConvTranspose decomposed into 4 output parities -----------------
    dpad = jnp.pad(d, ((0, 0), (1, 1), (1, 1), (0, 0)))                  # (N, Ho+2, Wo+2, ni)
    # per-parity tap-stacked weights: w_u[2p+q, (2a+b)*ni + ci, co]
    w_u = jnp.stack([
        jnp.concatenate([w_up[:, :, 3 - p - 2 * a, 3 - q - 2 * b]
                         for a in (0, 1) for b in (0, 1)], axis=0)
        for p in (0, 1) for q in (0, 1)]).astype(jnp.float32)            # (4, 4*ni, nf)
    u_par, stats = up_conv_with_stats(dpad, w_u, ho=ho, wo=wo, nf=nf)

    # -- BatchNorm2d (training-mode batch stats, gamma=1 / beta=0): stats were
    #    reduced inside the up-GEMM; the cheap normalize is folded into the
    #    parity-interleave / NCHW writeback glue. -----------------------------
    count = n * h * w
    mean = jnp.sum(stats[:, 0, :], axis=0) / count                       # (nf,)
    var = jnp.sum(stats[:, 1, :], axis=0) / count - mean * mean          # biased variance
    rstd = jax.lax.rsqrt(var + eps)
    bn = (u_par - mean[None, None, None, None, :]) * rstd[None, None, None, None, :]

    # interleave parities back to (N, H, W, nf), then NCHW + skip concat
    y = bn.reshape(2, 2, n, ho, wo, nf).transpose(2, 3, 0, 4, 1, 5).reshape(n, h, w, nf)
    out = jnp.transpose(y, (0, 3, 1, 2))
    # TODO(synk): write the normalized result directly into the channel slice
    # of a pre-allocated NCHW output (out_specs index_map + input_output_aliases)
    # to eliminate the final transpose + concatenate HBM passes.
    return jnp.concatenate([x_nchw, out], axis=1)                        # (N, 2*nf, H, W)


# ---------------------------------------------------------------------------
# Reference (mirrors the kernel's bf16-MXU / f32-accumulate precision so the
# comparison checks the structural transform, not rounding).
# ---------------------------------------------------------------------------
def reference_forward(x, w_down, w_up):
    h = jnp.where(x >= 0, x, 0.2 * x)
    d = jax.lax.conv_general_dilated(
        h.astype(jnp.bfloat16), w_down.astype(jnp.bfloat16), (2, 2), ((1, 1), (1, 1)),
        dimension_numbers=('NCHW', 'OIHW', 'NCHW'),
        preferred_element_type=jnp.float32)
    r = jnp.maximum(d, 0.0)
    wf = jnp.transpose(w_up, (1, 0, 2, 3))[:, :, ::-1, ::-1]
    u = jax.lax.conv_general_dilated(
        r.astype(jnp.bfloat16), wf.astype(jnp.bfloat16), (1, 1), ((2, 2), (2, 2)),
        lhs_dilation=(2, 2), dimension_numbers=('NCHW', 'OIHW', 'NCHW'),
        preferred_element_type=jnp.float32)
    mean = jnp.mean(u, axis=(0, 2, 3), keepdims=True)
    var = jnp.mean((u - mean) ** 2, axis=(0, 2, 3), keepdims=True)
    bn = (u - mean) * jax.lax.rsqrt(var + 1e-5)
    return jnp.concatenate([x, bn], axis=1)


if __name__ == "__main__":
    # UnetBlock(nf=4, ni=8, innermost=True) -> input_c = nf = 4
    nf, ni = 4, 8
    N, H, W = 2, 16, 16

    key = jax.random.PRNGKey(0)
    kx, kd, ku = jax.random.split(key, 3)
    x = jax.random.normal(kx, (N, nf, H, W), dtype=jnp.float32)
    w_down = 0.1 * jax.random.normal(kd, (ni, nf, 4, 4), dtype=jnp.float32)   # Conv2d (O, I, kH, kW)
    w_up = 0.1 * jax.random.normal(ku, (ni, nf, 4, 4), dtype=jnp.float32)     # ConvTranspose2d (I, O, kH, kW)

    out = jax.jit(unet_block_innermost)(x, w_down, w_up)
    out = jax.block_until_ready(out)

    ref = reference_forward(x, w_down, w_up)
    assert out.shape == (N, 2 * nf, H, W), out.shape
    err = float(jnp.max(jnp.abs(out - ref)))
    assert jnp.allclose(out, ref, rtol=1e-2, atol=1e-2), err

    print("KERNEL_OK")
</pallas_src>

<mosaic_0001>
module attributes {stable_mosaic.version = 11 : i64} {
  func.func @_down_kernel(%arg0: i32, %arg1: i32, %arg2: memref<1x1x9x9x4xf32, #tpu.memory_space<vmem>>, %arg3: memref<1x16x8xf32, #tpu.memory_space<vmem>>, %arg4: memref<1x8x8x8xf32, #tpu.memory_space<vmem>>, %arg5: memref<64x8xf32, #tpu.memory_space<vmem>>) attributes {dimension_semantics = [#tpu.dimension_semantics<parallel>, #tpu.dimension_semantics<arbitrary>], iteration_bounds = array<i64: 2, 4>, scalar_prefetch = 0 : i64, scratch_operands = 1 : i64, tpu.core_type = #tpu.core_type<tc>, window_params = [{transform_indices = @transform_0, window_bounds = array<i64: 1, 1, 9, 9, 4>}, {transform_indices = @transform_1, window_bounds = array<i64: 1, 16, 8>}, {transform_indices = @transform_2, window_bounds = array<i64: 1, 8, 8, 8>}]} {
    %c0_i32 = arith.constant 0 : i32
    %0 = arith.cmpi eq, %arg1, %c0_i32 : i32
    %1 = arith.extui %0 : i1 to i32
    %c0_i32_0 = arith.constant 0 : i32
    %2 = arith.cmpi ne, %1, %c0_i32_0 : i32
    scf.if %2 {
      %cst_15 = arith.constant 0.000000e+00 : f32
      %27 = vector.broadcast %cst_15 : f32 to vector<64x8xf32>
      %c0_16 = arith.constant 0 : index
      %c0_17 = arith.constant 0 : index
      %28 = vector.load %arg5[%c0_16, %c0_17] : memref<64x8xf32, #tpu.memory_space<vmem>>, vector<64x8xf32>
      tpu.vector_store %arg5[%c0_16, %c0_17], %27 {strides = array<i32>} : memref<64x8xf32, #tpu.memory_space<vmem>>, vector<64x8xf32>,
    } else {
    }
    %c0 = arith.constant 0 : index
    %c0_1 = arith.constant 0 : index
    %c0_2 = arith.constant 0 : index
    %c0_3 = arith.constant 0 : index
    %c0_4 = arith.constant 0 : index
    %3 = vector.load %arg2[%c0, %c0_1, %c0_2, %c0_3, %c0_4] : memref<1x1x9x9x4xf32, #tpu.memory_space<vmem>>, vector<1x1x9x9x4xf32>
    %4 = vector.shape_cast %3 : vector<1x1x9x9x4xf32> to vector<9x9x4xf32>
    %cst = arith.constant 0.000000e+00 : f32
    %5 = vector.broadcast %cst : f32 to vector<9x9x4xf32>
    %6 = arith.cmpf oge, %4, %5 : vector<9x9x4xf32>
    %cst_5 = arith.constant 2.000000e-01 : f32
    %7 = vector.broadcast %cst_5 : f32 to vector<9x9x4xf32>
    %8 = arith.mulf %7, %4 : vector<9x9x4xf32>
    %9 = arith.select %6, %4, %8 : vector<9x9x4xi1>, vector<9x9x4xf32>
    %10 = vector.extract_strided_slice %9 {offsets = [0, 0, 0], sizes = [8, 8, 4], strides = [1, 1, 1]} : vector<9x9x4xf32> to vector<8x8x4xf32>
    %11 = vector.extract_strided_slice %9 {offsets = [0, 1, 0], sizes = [8, 8, 4], strides = [1, 1, 1]} : vector<9x9x4xf32> to vector<8x8x4xf32>
    %12 = vector.extract_strided_slice %9 {offsets = [1, 0, 0], sizes = [8, 8, 4], strides = [1, 1, 1]} : vector<9x9x4xf32> to vector<8x8x4xf32>
    %13 = vector.extract_strided_slice %9 {offsets = [1, 1, 0], sizes = [8, 8, 4], strides = [1, 1, 1]} : vector<9x9x4xf32> to vector<8x8x4xf32>
    %14 = tpu.concatenate %10, %11, %12, %13 in 2 : vector<8x8x4xf32>, vector<8x8x4xf32>, vector<8x8x4xf32>, vector<8x8x4xf32> -> vector<8x8x16xf32>
    %15 = vector.shape_cast %14 : vector<8x8x16xf32> to vector<64x16xf32>
    %c0_6 = arith.constant 0 : index
    %c0_7 = arith.constant 0 : index
    %16 = vector.load %arg5[%c0_6, %c0_7] : memref<64x8xf32, #tpu.memory_space<vmem>>, vector<64x8xf32>
    %17 = arith.truncf %15 : vector<64x16xf32> to vector<64x16xbf16>
    %c0_8 = arith.constant 0 : index
    %c0_9 = arith.constant 0 : index
    %c0_10 = arith.constant 0 : index
    %18 = vector.load %arg3[%c0_8, %c0_9, %c0_10] : memref<1x16x8xf32, #tpu.memory_space<vmem>>, vector<1x16x8xf32>
    %19 = vector.shape_cast %18 : vector<1x16x8xf32> to vector<16x8xf32>
    %20 = arith.truncf %19 : vector<16x8xf32> to vector<16x8xbf16>
    %cst_11 = arith.constant dense<0.000000e+00> : vector<64x8xf32>
    %21 = tpu.matmul %17, %20, %cst_11 {dimension_numbers = #tpu.dot_dimension_numbers<[1], [0], [0], [1], [0, 0, 1, 1], [], []>} : vector<64x16xbf16>, vector<16x8xbf16>, vector<64x8xf32> -> vector<64x8xf32>
    %22 = arith.addf %16, %21 : vector<64x8xf32>
    %c0_12 = arith.constant 0 : index
    %c0_13 = arith.constant 0 : index
    %23 = vector.load %arg5[%c0_12, %c0_13] : memref<64x8xf32, #tpu.memory_space<vmem>>, vector<64x8xf32>
    tpu.vector_store %arg5[%c0_12, %c0_13], %22 {strides = array<i32>} : memref<64x8xf32, #tpu.memory_space<vmem>>, vector<64x8xf32>,
    %c3_i32 = arith.constant 3 : i32
    %24 = arith.cmpi eq, %arg1, %c3_i32 : i32
    %25 = arith.extui %24 : i1 to i32
    %c0_i32_14 = arith.constant 0 : i32
    %26 = arith.cmpi ne, %25, %c0_i32_14 : i32
    scf.if %26 {
      %c0_15 = arith.constant 0 : index
      %c0_16 = arith.constant 0 : index
      %27 = vector.load %arg5[%c0_15, %c0_16] : memref<64x8xf32, #tpu.memory_space<vmem>>, vector<64x8xf32>
      %28 = vector.shape_cast %27 : vector<64x8xf32> to vector<8x8x8xf32>
      %c0_17 = arith.constant 0 : index
      %c0_18 = arith.constant 0 : index
      %c0_19 = arith.constant 0 : index
      %c0_20 = arith.constant 0 : index
      %29 = vector.load %arg4[%c0_17, %c0_18, %c0_19, %c0_20] : memref<1x8x8x8xf32, #tpu.memory_space<vmem>>, vector<1x8x8x8xf32>
      %30 = vector.shape_cast %29 : vector<1x8x8x8xf32> to vector<8x8x8xf32>
      %31 = vector.shape_cast %28 : vector<8x8x8xf32> to vector<1x8x8x8xf32>
      tpu.vector_store %arg4[%c0_17, %c0_18, %c0_19, %c0_20], %31 {strides = array<i32>} : memref<1x8x8x8xf32, #tpu.memory_space<vmem>>, vector<1x8x8x8xf32>,
    } else {
    }
    return
  }
  func.func @transform_0(%arg0: i32, %arg1: i32) -> (i32, i32, i32, i32, i32) {
    %c0_i32 = arith.constant 0 : i32
    %c0_i32_0 = arith.constant 0 : i32
    %c0_i32_1 = arith.constant 0 : i32
    %c0_i32_2 = arith.constant 0 : i32
    return %arg1, %arg0, %c0_i32, %c0_i32_0, %c0_i32_1 : i32, i32, i32, i32, i32
  }
  func.func @transform_1(%arg0: i32, %arg1: i32) -> (i32, i32, i32) {
    %c0_i32 = arith.constant 0 : i32
    %c0_i32_0 = arith.constant 0 : i32
    %c0_i32_1 = arith.constant 0 : i32
    return %arg1, %c0_i32, %c0_i32_0 : i32, i32, i32
  }
  func.func @transform_2(%arg0: i32, %arg1: i32) -> (i32, i32, i32, i32) {
    %c0_i32 = arith.constant 0 : i32
    %c0_i32_0 = arith.constant 0 : i32
    %c0_i32_1 = arith.constant 0 : i32
    %c0_i32_2 = arith.constant 0 : i32
    return %arg0, %c0_i32, %c0_i32_0, %c0_i32_1 : i32, i32, i32, i32
  }
}

module attributes {stable_mosaic.version = 11 : i64} {
  func.func @_up_kernel(%arg0: i32, %arg1: memref<1x10x10x8xf32, #tpu.memory_space<vmem>>, %arg2: memref<4x32x4xf32, #tpu.memory_space<vmem>>, %arg3: memref<4x1x8x8x4xf32, #tpu.memory_space<vmem>>, %arg4: memref<1x2x4xf32, #tpu.memory_space<vmem>>) attributes {dimension_semantics = [#tpu.dimension_semantics<parallel>], iteration_bounds = array<i64: 2>, scalar_prefetch = 0 : i64, scratch_operands = 0 : i64, tpu.core_type = #tpu.core_type<tc>, window_params = [{transform_indices = @transform_0, window_bounds = array<i64: 1, 10, 10, 8>}, {pipeline_mode = #tpu.pipeline_mode<synchronous>, transform_indices = @transform_1, window_bounds = array<i64: 4, 32, 4>}, {transform_indices = @transform_2, window_bounds = array<i64: 4, 1, 8, 8, 4>}, {transform_indices = @transform_3, window_bounds = array<i64: 1, 2, 4>}]} {
    %c0 = arith.constant 0 : index
    %c0_0 = arith.constant 0 : index
    %c0_1 = arith.constant 0 : index
    %c0_2 = arith.constant 0 : index
    %0 = vector.load %arg1[%c0, %c0_0, %c0_1, %c0_2] : memref<1x10x10x8xf32, #tpu.memory_space<vmem>>, vector<1x10x10x8xf32>
    %1 = vector.shape_cast %0 : vector<1x10x10x8xf32> to vector<10x10x8xf32>
    %cst = arith.constant 0.000000e+00 : f32
    %2 = vector.broadcast %cst : f32 to vector<10x10x8xf32>
    %3 = arith.maximumf %1, %2 : vector<10x10x8xf32>
    %cst_3 = arith.constant 0.000000e+00 : f32
    %4 = vector.broadcast %cst_3 : f32 to vector<1x4xf32>
    %cst_4 = arith.constant 0.000000e+00 : f32
    %5 = vector.broadcast %cst_4 : f32 to vector<1x4xf32>
    %6 = vector.extract_strided_slice %3 {offsets = [0, 0, 0], sizes = [8, 8, 8], strides = [1, 1, 1]} : vector<10x10x8xf32> to vector<8x8x8xf32>
    %7 = vector.extract_strided_slice %3 {offsets = [0, 1, 0], sizes = [8, 8, 8], strides = [1, 1, 1]} : vector<10x10x8xf32> to vector<8x8x8xf32>
    %8 = vector.extract_strided_slice %3 {offsets = [1, 0, 0], sizes = [8, 8, 8], strides = [1, 1, 1]} : vector<10x10x8xf32> to vector<8x8x8xf32>
    %9 = vector.extract_strided_slice %3 {offsets = [1, 1, 0], sizes = [8, 8, 8], strides = [1, 1, 1]} : vector<10x10x8xf32> to vector<8x8x8xf32>
    %10 = tpu.concatenate %6, %7, %8, %9 in 2 : vector<8x8x8xf32>, vector<8x8x8xf32>, vector<8x8x8xf32>, vector<8x8x8xf32> -> vector<8x8x32xf32>
    %11 = vector.shape_cast %10 : vector<8x8x32xf32> to vector<64x32xf32>
    %12 = arith.truncf %11 : vector<64x32xf32> to vector<64x32xbf16>
    %c0_5 = arith.constant 0 : index
    %c0_6 = arith.constant 0 : index
    %c0_7 = arith.constant 0 : index
    %13 = vector.load %arg2[%c0_5, %c0_6, %c0_7] : memref<4x32x4xf32, #tpu.memory_space<vmem>>, vector<1x32x4xf32>
    %14 = vector.shape_cast %13 : vector<1x32x4xf32> to vector<32x4xf32>
    %15 = arith.truncf %14 : vector<32x4xf32> to vector<32x4xbf16>
    %cst_8 = arith.constant dense<0.000000e+00> : vector<64x4xf32>
    %16 = tpu.matmul %12, %15, %cst_8 {dimension_numbers = #tpu.dot_dimension_numbers<[1], [0], [0], [1], [0, 0, 1, 1], [], []>} : vector<64x32xbf16>, vector<32x4xbf16>, vector<64x4xf32> -> vector<64x4xf32>
    %17 = vector.shape_cast %16 : vector<64x4xf32> to vector<8x8x4xf32>
    %c0_9 = arith.constant 0 : index
    %c0_10 = arith.constant 0 : index
    %c0_11 = arith.constant 0 : index
    %c0_12 = arith.constant 0 : index
    %c0_13 = arith.constant 0 : index
    %18 = vector.load %arg3[%c0_9, %c0_10, %c0_11, %c0_12, %c0_13] : memref<4x1x8x8x4xf32, #tpu.memory_space<vmem>>, vector<1x1x8x8x4xf32>
    %19 = vector.shape_cast %18 : vector<1x1x8x8x4xf32> to vector<8x8x4xf32>
    %20 = vector.shape_cast %17 : vector<8x8x4xf32> to vector<1x1x8x8x4xf32>
    tpu.vector_store %arg3[%c0_9, %c0_10, %c0_11, %c0_12, %c0_13], %20 {strides = array<i32>} : memref<4x1x8x8x4xf32, #tpu.memory_space<vmem>>, vector<1x1x8x8x4xf32>,
    %cst_14 = arith.constant dense<0.000000e+00> : vector<4xf32>
    %21 = vector.multi_reduction <add>, %16, %cst_14 [0] : vector<64x4xf32> to vector<4xf32>
    %22 = vector.shape_cast %21 : vector<4xf32> to vector<1x4xf32>
    %23 = arith.addf %4, %22 : vector<1x4xf32>
    %24 = arith.mulf %16, %16 : vector<64x4xf32>
    %cst_15 = arith.constant dense<0.000000e+00> : vector<4xf32>
    %25 = vector.multi_reduction <add>, %24, %cst_15 [0] : vector<64x4xf32> to vector<4xf32>
    %26 = vector.shape_cast %25 : vector<4xf32> to vector<1x4xf32>
    %27 = arith.addf %5, %26 : vector<1x4xf32>
    %28 = vector.extract_strided_slice %3 {offsets = [0, 1, 0], sizes = [8, 8, 8], strides = [1, 1, 1]} : vector<10x10x8xf32> to vector<8x8x8xf32>
    %29 = vector.extract_strided_slice %3 {offsets = [0, 2, 0], sizes = [8, 8, 8], strides = [1, 1, 1]} : vector<10x10x8xf32> to vector<8x8x8xf32>
    %30 = vector.extract_strided_slice %3 {offsets = [1, 1, 0], sizes = [8, 8, 8], strides = [1, 1, 1]} : vector<10x10x8xf32> to vector<8x8x8xf32>
    %31 = vector.extract_strided_slice %3 {offsets = [1, 2, 0], sizes = [8, 8, 8], strides = [1, 1, 1]} : vector<10x10x8xf32> to vector<8x8x8xf32>
    %32 = tpu.concatenate %28, %29, %30, %31 in 2 : vector<8x8x8xf32>, vector<8x8x8xf32>, vector<8x8x8xf32>, vector<8x8x8xf32> -> vector<8x8x32xf32>
    %33 = vector.shape_cast %32 : vector<8x8x32xf32> to vector<64x32xf32>
    %34 = arith.truncf %33 : vector<64x32xf32> to vector<64x32xbf16>
    %c1 = arith.constant 1 : index
    %c0_16 = arith.constant 0 : index
    %c0_17 = arith.constant 0 : index
    %35 = vector.load %arg2[%c1, %c0_16, %c0_17] : memref<4x32x4xf32, #tpu.memory_space<vmem>>, vector<1x32x4xf32>
    %36 = vector.shape_cast %35 : vector<1x32x4xf32> to vector<32x4xf32>
    %37 = arith.truncf %36 : vector<32x4xf32> to vector<32x4xbf16>
    %cst_18 = arith.constant dense<0.000000e+00> : vector<64x4xf32>
    %38 = tpu.matmul %34, %37, %cst_18 {dimension_numbers = #tpu.dot_dimension_numbers<[1], [0], [0], [1], [0, 0, 1, 1], [], []>} : vector<64x32xbf16>, vector<32x4xbf16>, vector<64x4xf32> -> vector<64x4xf32>
    %39 = vector.shape_cast %38 : vector<64x4xf32> to vector<8x8x4xf32>
    %c1_19 = arith.constant 1 : index
    %c0_20 = arith.constant 0 : index
    %c0_21 = arith.constant 0 : index
    %c0_22 = arith.constant 0 : index
    %c0_23 = arith.constant 0 : index
    %40 = vector.load %arg3[%c1_19, %c0_20, %c0_21, %c0_22, %c0_23] : memref<4x1x8x8x4xf32, #tpu.memory_space<vmem>>, vector<1x1x8x8x4xf32>
    %41 = vector.shape_cast %40 : vector<1x1x8x8x4xf32> to vector<8x8x4xf32>
    %42 = vector.shape_cast %39 : vector<8x8x4xf32> to vector<1x1x8x8x4xf32>
    tpu.vector_store %arg3[%c1_19, %c0_20, %c0_21, %c0_22, %c0_23], %42 {strides = array<i32>} : memref<4x1x8x8x4xf32, #tpu.memory_space<vmem>>, vector<1x1x8x8x4xf32>,
    %cst_24 = arith.constant dense<0.000000e+00> : vector<4xf32>
    %43 = vector.multi_reduction <add>, %38, %cst_24 [0] : vector<64x4xf32> to vector<4xf32>
    %44 = vector.shape_cast %43 : vector<4xf32> to vector<1x4xf32>
    %45 = arith.addf %23, %44 : vector<1x4xf32>
    %46 = arith.mulf %38, %38 : vector<64x4xf32>
    %cst_25 = arith.constant dense<0.000000e+00> : vector<4xf32>
    %47 = vector.multi_reduction <add>, %46, %cst_25 [0] : vector<64x4xf32> to vector<4xf32>
    %48 = vector.shape_cast %47 : vector<4xf32> to vector<1x4xf32>
    %49 = arith.addf %27, %48 : vector<1x4xf32>
    %50 = vector.extract_strided_slice %3 {offsets = [1, 0, 0], sizes = [8, 8, 8], strides = [1, 1, 1]} : vector<10x10x8xf32> to vector<8x8x8xf32>
    %51 = vector.extract_strided_slice %3 {offsets = [1, 1, 0], sizes = [8, 8, 8], strides = [1, 1, 1]} : vector<10x10x8xf32> to vector<8x8x8xf32>
    %52 = vector.extract_strided_slice %3 {offsets = [2, 0, 0], sizes = [8, 8, 8], strides = [1, 1, 1]} : vector<10x10x8xf32> to vector<8x8x8xf32>
    %53 = vector.extract_strided_slice %3 {offsets = [2, 1, 0], sizes = [8, 8, 8], strides = [1, 1, 1]} : vector<10x10x8xf32> to vector<8x8x8xf32>
    %54 = tpu.concatenate %50, %51, %52, %53 in 2 : vector<8x8x8xf32>, vector<8x8x8xf32>, vector<8x8x8xf32>, vector<8x8x8xf32> -> vector<8x8x32xf32>
    %55 = vector.shape_cast %54 : vector<8x8x32xf32> to vector<64x32xf32>
    %56 = arith.truncf %55 : vector<64x32xf32> to vector<64x32xbf16>
    %c2 = arith.constant 2 : index
    %c0_26 = arith.constant 0 : index
    %c0_27 = arith.constant 0 : index
    %57 = vector.load %arg2[%c2, %c0_26, %c0_27] : memref<4x32x4xf32, #tpu.memory_space<vmem>>, vector<1x32x4xf32>
    %58 = vector.shape_cast %57 : vector<1x32x4xf32> to vector<32x4xf32>
    %59 = arith.truncf %58 : vector<32x4xf32> to vector<32x4xbf16>
    %cst_28 = arith.constant dense<0.000000e+00> : vector<64x4xf32>
    %60 = tpu.matmul %56, %59, %cst_28 {dimension_numbers = #tpu.dot_dimension_numbers<[1], [0], [0], [1], [0, 0, 1, 1], [], []>} : vector<64x32xbf16>, vector<32x4xbf16>, vector<64x4xf32> -> vector<64x4xf32>
    %61 = vector.shape_cast %60 : vector<64x4xf32> to vector<8x8x4xf32>
    %c2_29 = arith.constant 2 : index
    %c0_30 = arith.constant 0 : index
    %c0_31 = arith.constant 0 : index
    %c0_32 = arith.constant 0 : index
    %c0_33 = arith.constant 0 : index
    %62 = vector.load %arg3[%c2_29, %c0_30, %c0_31, %c0_32, %c0_33] : memref<4x1x8x8x4xf32, #tpu.memory_space<vmem>>, vector<1x1x8x8x4xf32>
    %63 = vector.shape_cast %62 : vector<1x1x8x8x4xf32> to vector<8x8x4xf32>
    %64 = vector.shape_cast %61 : vector<8x8x4xf32> to vector<1x1x8x8x4xf32>
    tpu.vector_store %arg3[%c2_29, %c0_30, %c0_31, %c0_32, %c0_33], %64 {strides = array<i32>} : memref<4x1x8x8x4xf32, #tpu.memory_space<vmem>>, vector<1x1x8x8x4xf32>,
    %cst_34 = arith.constant dense<0.000000e+00> : vector<4xf32>
    %65 = vector.multi_reduction <add>, %60, %cst_34 [0] : vector<64x4xf32> to vector<4xf32>
    %66 = vector.shape_cast %65 : vector<4xf32> to vector<1x4xf32>
    %67 = arith.addf %45, %66 : vector<1x4xf32>
    %68 = arith.mulf %60, %60 : vector<64x4xf32>
    %cst_35 = arith.constant dense<0.000000e+00> : vector<4xf32>
    %69 = vector.multi_reduction <add>, %68, %cst_35 [0] : vector<64x4xf32> to vector<4xf32>
    %70 = vector.shape_cast %69 : vector<4xf32> to vector<1x4xf32>
    %71 = arith.addf %49, %70 : vector<1x4xf32>
    %72 = vector.extract_strided_slice %3 {offsets = [1, 1, 0], sizes = [8, 8, 8], strides = [1, 1, 1]} : vector<10x10x8xf32> to vector<8x8x8xf32>
    %73 = vector.extract_strided_slice %3 {offsets = [1, 2, 0], sizes = [8, 8, 8], strides = [1, 1, 1]} : vector<10x10x8xf32> to vector<8x8x8xf32>
    %74 = vector.extract_strided_slice %3 {offsets = [2, 1, 0], sizes = [8, 8, 8], strides = [1, 1, 1]} : vector<10x10x8xf32> to vector<8x8x8xf32>
    %75 = vector.extract_strided_slice %3 {offsets = [2, 2, 0], sizes = [8, 8, 8], strides = [1, 1, 1]} : vector<10x10x8xf32> to vector<8x8x8xf32>
    %76 = tpu.concatenate %72, %73, %74, %75 in 2 : vector<8x8x8xf32>, vector<8x8x8xf32>, vector<8x8x8xf32>, vector<8x8x8xf32> -> vector<8x8x32xf32>
    %77 = vector.shape_cast %76 : vector<8x8x32xf32> to vector<64x32xf32>
    %78 = arith.truncf %77 : vector<64x32xf32> to vector<64x32xbf16>
    %c3 = arith.constant 3 : index
    %c0_36 = arith.constant 0 : index
    %c0_37 = arith.constant 0 : index
    %79 = vector.load %arg2[%c3, %c0_36, %c0_37] : memref<4x32x4xf32, #tpu.memory_space<vmem>>, vector<1x32x4xf32>
    %80 = vector.shape_cast %79 : vector<1x32x4xf32> to vector<32x4xf32>
    %81 = arith.truncf %80 : vector<32x4xf32> to vector<32x4xbf16>
    %cst_38 = arith.constant dense<0.000000e+00> : vector<64x4xf32>
    %82 = tpu.matmul %78, %81, %cst_38 {dimension_numbers = #tpu.dot_dimension_numbers<[1], [0], [0], [1], [0, 0, 1, 1], [], []>} : vector<64x32xbf16>, vector<32x4xbf16>, vector<64x4xf32> -> vector<64x4xf32>
    %83 = vector.shape_cast %82 : vector<64x4xf32> to vector<8x8x4xf32>
    %c3_39 = arith.constant 3 : index
    %c0_40 = arith.constant 0 : index
    %c0_41 = arith.constant 0 : index
    %c0_42 = arith.constant 0 : index
    %c0_43 = arith.constant 0 : index
    %84 = vector.load %arg3[%c3_39, %c0_40, %c0_41, %c0_42, %c0_43] : memref<4x1x8x8x4xf32, #tpu.memory_space<vmem>>, vector<1x1x8x8x4xf32>
    %85 = vector.shape_cast %84 : vector<1x1x8x8x4xf32> to vector<8x8x4xf32>
    %86 = vector.shape_cast %83 : vector<8x8x4xf32> to vector<1x1x8x8x4xf32>
    tpu.vector_store %arg3[%c3_39, %c0_40, %c0_41, %c0_42, %c0_43], %86 {strides = array<i32>} : memref<4x1x8x8x4xf32, #tpu.memory_space<vmem>>, vector<1x1x8x8x4xf32>,
    %cst_44 = arith.constant dense<0.000000e+00> : vector<4xf32>
    %87 = vector.multi_reduction <add>, %82, %cst_44 [0] : vector<64x4xf32> to vector<4xf32>
    %88 = vector.shape_cast %87 : vector<4xf32> to vector<1x4xf32>
    %89 = arith.addf %67, %88 : vector<1x4xf32>
    %90 = arith.mulf %82, %82 : vector<64x4xf32>
    %cst_45 = arith.constant dense<0.000000e+00> : vector<4xf32>
    %91 = vector.multi_reduction <add>, %90, %cst_45 [0] : vector<64x4xf32> to vector<4xf32>
    %92 = vector.shape_cast %91 : vector<4xf32> to vector<1x4xf32>
    %93 = arith.addf %71, %92 : vector<1x4xf32>
    %94 = tpu.concatenate %89, %93 in 0 : vector<1x4xf32>, vector<1x4xf32> -> vector<2x4xf32>
    %c0_46 = arith.constant 0 : index
    %c0_47 = arith.constant 0 : index
    %c0_48 = arith.constant 0 : index
    %95 = vector.load %arg4[%c0_46, %c0_47, %c0_48] : memref<1x2x4xf32, #tpu.memory_space<vmem>>, vector<1x2x4xf32>
    %96 = vector.shape_cast %95 : vector<1x2x4xf32> to vector<2x4xf32>
    %97 = vector.shape_cast %94 : vector<2x4xf32> to vector<1x2x4xf32>
    tpu.vector_store %arg4[%c0_46, %c0_47, %c0_48], %97 {strides = array<i32>} : memref<1x2x4xf32, #tpu.memory_space<vmem>>, vector<1x2x4xf32>,
    return
  }
  func.func @transform_0(%arg0: i32) -> (i32, i32, i32, i32) {
    %c0_i32 = arith.constant 0 : i32
    %c0_i32_0 = arith.constant 0 : i32
    %c0_i32_1 = arith.constant 0 : i32
    %c0_i32_2 = arith.constant 0 : i32
    return %arg0, %c0_i32, %c0_i32_0, %c0_i32_1 : i32, i32, i32, i32
  }
  func.func @transform_1(%arg0: i32) -> (i32, i32, i32) {
    %c0_i32 = arith.constant 0 : i32
    %c0_i32_0 = arith.constant 0 : i32
    %c0_i32_1 = arith.constant 0 : i32
    %c0_i32_2 = arith.constant 0 : i32
    return %c0_i32, %c0_i32_0, %c0_i32_1 : i32, i32, i32
  }
  func.func @transform_2(%arg0: i32) -> (i32, i32, i32, i32, i32) {
    %c0_i32 = arith.constant 0 : i32
    %c0_i32_0 = arith.constant 0 : i32
    %c0_i32_1 = arith.constant 0 : i32
    %c0_i32_2 = arith.constant 0 : i32
    %c0_i32_3 = arith.constant 0 : i32
    return %c0_i32, %arg0, %c0_i32_0, %c0_i32_1, %c0_i32_2 : i32, i32, i32, i32, i32
  }
  func.func @transform_3(%arg0: i32) -> (i32, i32, i32) {
    %c0_i32 = arith.constant 0 : i32
    %c0_i32_0 = arith.constant 0 : i32
    %c0_i32_1 = arith.constant 0 : i32
    return %arg0, %c0_i32, %c0_i32_0 : i32, i32, i32
  }
}

</mosaic_0001>

<bundles_post_ra>
// kernel: unet_block_innermost.2
= control target key start
LH: loop header
LB: loop body
LE: loop exit
PB: predicated region body
PF: predicated region fallthrough
CT: control target
= control target key end

     0   :  { %s839_s9 = smov 0   ;;  %s841_s10 = smov 0   ;;  %s1045_s0 = inlined_call_operand.vmem [shape: f32[4,2,9,9,4], index: 0, kind: input, shape index: {}]   ;;  %s1046_s1 = inlined_call_operand.vmem [shape: f32[4,16,8], index: 1, kind: input, shape index: {}]   ;;  %s1047_s2 = inlined_call_operand.vmem [shape: f32[2,8,8,8], index: 2, kind: output, shape index: {}]  }
   0x1   :  { %s843_s11 = smov 0   ;;  %s845_s12 = smov 0  }
   0x2   :  { %s847_s13 = smov 0  }
   0x3 LB: > { %s21_s14 = sadd.s32 1, %s810_s11  ;;  %s24_s15 = sadd.s32 1, %s814_s12  ;;  %s818_s13 = sphi %s847_s13, %s12_s13   ;;  %s814_s12 = sphi %s845_s12, %s1051_s12   ;;  %s810_s11 = sphi %s843_s11, %s1050_s11   ;;  %s806_s10 = sphi %s841_s10, %s1049_s10   ;;  %s802_s9 = sphi %s839_s9, %s1048_s9  }
   0x4   : > { %p22_p0 = scmp.ge.s32.totalorder %s21_s14, 4  ;;  %p641_p1 = scmp.ge.s32.totalorder %s818_s13, 1 }
   0x5   : > { %p140_p2 = scmp.lt.s32.totalorder %s818_s13, 9 }
   0x6   : > { %s1053_s14 = smov (%p22_p0, %s21_s14), 0  ;;  %s1055_s15 = smov (!%p22_p0, %s24_s15), %s814_s12 }
   0x7   : > { %p141_p3 = pnand %p641_p1, %p140_p2  ;;  %p26_p4 = scmp.ge.s32.totalorder %s1055_s15, 2 }
   0x8   : > { %p171_p5 = scmp.lt.s32.totalorder (!%p141_p3), %s802_s9, 3  ;;  %p173_p6 = scmp.lt.s32.totalorder (!%p141_p3), %s806_s10, 1 }
   0x9   : > { %s1057_s15 = smov (%p26_p4, %s1055_s15), 0  ;;  %144 = sbr.rel (%p141_p3) target bundleno = 400 (0x190), region = 28 }
   0xa   : > { %p647_p7 = scmp.ne.s32.totalorder (!%p141_p3), %s802_s9, 0 }
   0xe   : > { %s172_s16 = scalar_select %p171_p5, %s802_s9, 3 }
   0xf   : > { %s1059_s10 = smov (!%p173_p6, %s806_s10), 1 }
  0x10   : > { %s675_s17 = smul.u32 36, %s172_s16  ;;  %s655_s18 = sshll.u32 %s172_s16, 4 }
  0x11   : > { %s674_s19 = smul.u32 18, %s1059_s10  ;;  %s876_s22 = scalar_lea.vmem %s1046_s1, %s655_s18 }
  0x12   : > { %s656_s23 = sshll.u32 %s1059_s10, 6  ;;  %194 = sbr.rel (%p647_p7) target bundleno = 28 (0x1c), region = 32 }
  0x13   : > { %s177_s24 = sadd.s32 %s675_s17, %s674_s19  ;;  %s881_s27 = scalar_lea.vmem %s1047_s2, %s656_s23 }
  0x14   : > { %s642_s28 = sshll.u32 %s177_s24, 3 }
  0x15   : > { %s886_s3 = scalar_lea.vmem %s1045_s0, %s642_s28 }
  0x17   : > { %vm195_vm0 = vcmask 64512   ;;  %v820_v0 = vmov 0.0  }
  0x18   : > { %196 = vst.msk [vmem:[#allocation2] sm:$0xff] %vm195_vm0, %v820_v0  ;;  %197 = vst.msk [vmem:[#allocation2 + $0x8] sm:$0xff] %vm195_vm0, %v820_v0 }
  0x19   : > { %198 = vst.msk [vmem:[#allocation2 + $0x10] sm:$0xff] %vm195_vm0, %v820_v0  ;;  %199 = vst.msk [vmem:[#allocation2 + $0x18] sm:$0xff] %vm195_vm0, %v820_v0 }
  0x1a   : > { %200 = vst.msk [vmem:[#allocation2 + $0x20] sm:$0xff] %vm195_vm0, %v820_v0  ;;  %201 = vst.msk [vmem:[#allocation2 + $0x28] sm:$0xff] %vm195_vm0, %v820_v0 }
  0x1b   : > { %202 = vst.msk [vmem:[#allocation2 + $0x30] sm:$0xff] %vm195_vm0, %v820_v0  ;;  %203 = vst.msk [vmem:[#allocation2 + $0x38] sm:$0xff] %vm195_vm0, %v820_v0 }
  0x1c PF: > { %v210_v1 = vld [vmem:[%s886_s3 + $0x30] sm:$0xff]  ;;  %v211_v2 = vld [vmem:[%s886_s3 + $0x38] sm:$0x1]  ;;  %v212_v3 = vld [vmem:[%s886_s3 + $0x40] sm:$0xff]  ;;  %vm292_vm7 = vcmask 1046528   ;;  %s821_s4 = smov 4  }
  0x1d   : > { %v213_v4 = vld [vmem:[%s886_s3 + $0x48] sm:$0x1]  ;;  %vm228_vm1 = vcmp.ge.f32.partialorder %v210_v1, 0.0  ;;  %vm229_vm2 = vcmp.ge.f32.partialorder %v211_v2, 0.0  ;;  %v208_v5 = vld [vmem:[%s886_s3 + $0x20] sm:$0xff]  ;;  %vm230_vm3 = vcmp.ge.f32.partialorder %v212_v3, 0.0 }
  0x1e   : > { %v246_v6 = vmul.f32 0.2, %v210_v1  ;;  %v247_v7 = vmul.f32 0.2, %v211_v2  ;;  %vm226_vm4 = vcmp.ge.f32.partialorder %v208_v5, 0.0  ;;  %vm231_vm5 = vcmp.ge.f32.partialorder %v213_v4, 0.0 }
  0x1f   : > { %v248_v8 = vmul.f32 0.2, %v212_v3  ;;  %v249_v9 = vmul.f32 0.2, %v213_v4  ;;  %v209_v10 = vld [vmem:[%s886_s3 + $0x28] sm:$0x1] }
  0x20   : > { %v895_v11 = vsel %vm228_vm1, %v210_v1, %v246_v6  ;;  %v265_v12 = vsel %vm229_vm2, %v211_v2, %v247_v7  ;;  %v244_v13 = vmul.f32 0.2, %v208_v5  ;;  %v206_v14 = vld [vmem:[%s886_s3 + $0x10] sm:$0xff]  ;;  %v207_v15 = vld [vmem:[%s886_s3 + $0x18] sm:$0x1]  ;;  %vm227_vm6 = vcmp.ge.f32.partialorder %v209_v10, 0.0 }
  0x21   : > { %v899_v16 = vsel %vm230_vm3, %v212_v3, %v248_v8  ;;  %v302_v17 = vrot.slane %v895_v11, 1  ;;  %v303_v18 = vrot.slane %v265_v12, 1  ;;  %v245_v19 = vmul.f32 0.2, %v209_v10  ;;  %v204_v21 = vld [vmem:[%s886_s3] sm:$0xff]  ;;  %v218_v41 = vld [vmem:[%s886_s3 + $0x70] sm:$0xff] }
  0x22   : > { %v903_v20 = vsel %vm226_vm4, %v208_v5, %v244_v13  ;;  %v205_v22 = vld [vmem:[%s886_s3 + $0x8] sm:$0x1]  ;;  %v267_v23 = vsel %vm231_vm5, %v213_v4, %v249_v9  ;;  %vm224_vm8 = vcmp.ge.f32.partialorder %v206_v14, 0.0  ;;  %vm225_vm9 = vcmp.ge.f32.partialorder %v207_v15, 0.0  ;;  %v216_v31 = vld [vmem:[%s886_s3 + $0x60] sm:$0xff]  ;;  %v214_v46 = vld [vmem:[%s886_s3 + $0x50] sm:$0xff] }
  0x23   : > { %v299_v24 = vrot.slane %v903_v20, 1  ;;  %v305_v25 = vrot.slane %v899_v16, 1  ;;  %v263_v26 = vsel %vm227_vm6, %v209_v10, %v245_v19  ;;  %v242_v27 = vmul.f32 0.2, %v206_v14  ;;  %v217_v36 = vld [vmem:[%s886_s3 + $0x68] sm:$0x1] }
  0x24   : > { %v243_v28 = vmul.f32 0.2, %v207_v15  ;;  %v910_v29 = vsel %vm292_vm7, %v302_v17, %v303_v18  ;;  %v300_v30 = vrot.slane %v263_v26, 1  ;;  %vm222_vm10 = vcmp.ge.f32.partialorder %v204_v21, 0.0  ;;  %v219_v42 = vld [vmem:[%s886_s3 + $0x78] sm:$0x1] }
  0x25   : > { %vm223_vm11 = vcmp.ge.f32.partialorder %v205_v22, 0.0  ;;  %v913_v32 = vsel %vm224_vm8, %v206_v14, %v242_v27  ;;  %v240_v34 = vmul.f32 0.2, %v204_v21  ;;  %v241_v35 = vmul.f32 0.2, %v205_v22  ;;  %v220_v63 = vld [vmem:[%s886_s3 + $0x80] sm:$0xff] }
  0x26   : > { %v261_v33 = vsel %vm225_vm9, %v207_v15, %v243_v28  ;;  %v306_v37 = vrot.slane %v267_v23, 1  ;;  %v917_v38 = vsel %vm292_vm7, %v299_v24, %v300_v30  ;;  %v296_v39 = vrot.slane %v913_v32, 1  ;;  %v215_v50 = vld [vmem:[%s886_s3 + $0x58] sm:$0x1]  ;;  %v221_v6 = vld [vmem:[%s886_s3 + $0x88] sm:$0x1] }
  0x27   : > { %v297_v40 = vrot.slane %v261_v33, 1  ;;  %v735_v43 = vpack.i.bf16 %v910_v29, %v917_v38  ;;  %v924_v44 = vsel %vm222_vm10, %v204_v21, %v240_v34  ;;  %v259_v45 = vsel %vm223_vm11, %v205_v22, %v241_v35  ;;  %s822_s5 = smov 8   ;;  %v434_v26 = vld [vmem:[%s876_s22 + $0x8] sm:$0xff]  ;;  %s823_s6 = smov 12  }
  0x28   : > { %vm234_vm12 = vcmp.ge.f32.partialorder %v216_v31, 0.0  ;;  %v293_v48 = vrot.slane %v924_v44, 1  ;;  %v294_v49 = vrot.slane %v259_v45, 1  ;;  %vm235_vm13 = vcmp.ge.f32.partialorder %v217_v36, 0.0  ;;  %p652_p8 = scmp.ne.s32.totalorder %s802_s9, 3 }
  0x29   : > { %v928_v47 = vsel %vm292_vm7, %v296_v39, %v297_v40  ;;  %736 = vrot.lane.b32.xlu1 %v735_v43, %s821_s4  ;;  %vm236_vm14 = vcmp.ge.f32.partialorder %v218_v41, 0.0  ;;  %vm237_vm15 = vcmp.ge.f32.partialorder %v219_v42, 0.0  ;;  %v252_v51 = vmul.f32 0.2, %v216_v31 }
  0x2a   : > { %v253_v52 = vmul.f32 0.2, %v217_v36  ;;  %v295_v53 = vsel %vm292_vm7, %v293_v48, %v294_v49  ;;  %v254_v54 = vmul.f32 0.2, %v218_v41  ;;  %v255_v55 = vmul.f32 0.2, %v219_v42 }
  0x2b   : > { %vm232_vm0 = vcmp.ge.f32.partialorder %v214_v46, 0.0  ;;  %v720_v56 = vpack.i.bf16 %v928_v47, %v295_v53  ;;  %v936_v57 = vsel %vm234_vm12, %v216_v31, %v252_v51  ;;  %vm233_vm1 = vcmp.ge.f32.partialorder %v215_v50, 0.0 }
  0x2c   : > { %v271_v58 = vsel %vm235_vm13, %v217_v36, %v253_v52  ;;  %v938_v59 = vsel %vm236_vm14, %v218_v41, %v254_v54  ;;  %v273_v60 = vsel %vm237_vm15, %v219_v42, %v255_v55  ;;  %v311_v61 = vrot.slane %v936_v57, 1 }
  0x2d   : > { %v312_v62 = vrot.slane %v271_v58, 1  ;;  %721 = vrot.lane.b32.xlu0 %v720_v56, %s821_s4  ;;  %v314_v0 = vrot.slane %v938_v59, 1  ;;  %v315_v1 = vrot.slane %v273_v60, 1  ;;  %v250_v2 = vmul.f32 0.2, %v214_v46 }
  0x2e   : > { %v251_v3 = vmul.f32 0.2, %v215_v50  ;;  %v307_v4 = vsel %vm292_vm7, %v305_v25, %v306_v37  ;;  %v256_v10 = vmul.f32 0.2, %v220_v63  ;;  %vm238_vm2 = vcmp.ge.f32.partialorder %v220_v63, 0.0  ;;  %v433_v25 = vld [vmem:[%s876_s22] sm:$0xff] }
  0x2f   : > { %v313_v5 = vsel %vm292_vm7, %v311_v61, %v312_v62  ;;  %v316_v7 = vsel %vm292_vm7, %v314_v0, %v315_v1  ;;  %v949_v8 = vsel %vm232_vm0, %v214_v46, %v250_v2  ;;  %vm239_vm3 = vcmp.ge.f32.partialorder %v221_v6, 0.0 }
  0x30   : > { %v269_v9 = vsel %vm233_vm1, %v215_v50, %v251_v3  ;;  %v740_v12 = vpack.i.bf16 %v316_v7, %v313_v5  ;;  %v308_v13 = vrot.slane %v949_v8, 1  ;;  %v257_v15 = vmul.f32 0.2, %v221_v6 }
  0x31   : > { %v309_v14 = vrot.slane %v269_v9, 1  ;;  %v745_v18 = vpack.i.bf16 %v936_v57, %v949_v8  ;;  %v274_v21 = vsel %vm238_vm2, %v220_v63, %v256_v10  ;;  %v730_v23 = vpack.i.bf16 %v903_v20, %v913_v32 }
  0x32   : > { %741 = vrot.lane.b32.xlu1 %v740_v12, %s821_s4  ;;  %v275_v22 = vsel %vm239_vm3, %v221_v6, %v257_v15  ;;  %v755_v24 = vpack.i.bf16 %v274_v21, %v938_v59  ;;  %v367_v27 = vrot.slane %v274_v21, 1  ;;  %v435_v30 = vpack.c.bf16 %v434_v26, %v433_v25 }
  0x33   : > { %v310_v17 = vsel %vm292_vm7, %v308_v13, %v309_v14  ;;  %v368_v28 = vrot.slane %v275_v22, 1  ;;  %v750_v31 = vpack.i.bf16 %v899_v16, %v895_v11  ;;  %v760_v35 = vpack.i.bf16 %v917_v38, %v928_v47 }
  0x34   : > { %v725_v19 = vpack.i.bf16 %v310_v17, %v307_v4  ;;  %662 = vmatprep.subr.bf16.mxu0 %v435_v30  ;;  %v765_v33 = vpack.i.bf16 %v313_v5, %v310_v17  ;;  %672 = vmatprep.subr.bf16.mxu1 %v435_v30  ;;  %v770_v37 = vpack.i.bf16 %v307_v4, %v910_v29  ;;  %vm394_vm4 = vcmask 31744  }
  0x35   : > { %v369_v34 = vsel %vm292_vm7, %v367_v27, %v368_v28  ;;  %663 = vmatpush3.bf16.msra.mxu0 %v435_v30  ;;  %673 = vmatpush3.bf16.msra.mxu1 %v435_v30  ;;  %vm403_vm5 = vcmask 64512   ;;  %vm412_vm6 = vcmask 97280   ;;  %vm436_vm7 = vcmask 130048  }
  0x36   : > { %726 = vrot.lane.b32.xlu0 %v725_v19, %s821_s4  ;;  %746 = vrot.lane.b32.xlu1 %v745_v18, %s822_s5  ;;  %v775_v36 = vpack.i.bf16 %v369_v34, %v316_v7 }
  0x3a   : > { %731 = vrot.lane.b32.xlu0 %v730_v23, %s822_s5  ;;  %756 = vrot.lane.b32.xlu1 %v755_v24, %s822_s5 }
  0x3e   : > { %751 = vrot.lane.b32.xlu0 %v750_v31, %s822_s5  ;;  %766 = vrot.lane.b32.xlu1 %v765_v33, %s823_s6 }
  0x42   : > { %761 = vrot.lane.b32.xlu0 %v760_v35, %s823_s6  ;;  %776 = vrot.lane.b32.xlu1 %v775_v36, %s823_s6 }
  0x46   : > { %771 = vrot.lane.b32.xlu0 %v770_v37, %s823_s6 }
  0x9b   : > { %v737_v39 = vpop.permute.xlu1 %736 }
  0x9c   : > { %v739_v29 = vunpack.i.h.bf16 %v737_v39  ;;  %v738_v53 = vunpack.i.l.bf16 %v737_v39 }
  0x9e   : > { %v398_v24 = vsel %vm394_vm4, %v895_v11, %v739_v29  ;;  %v397_v30 = vsel %vm394_vm4, %v903_v20, %v738_v53  ;;  %v424_v29 = vld [vmem:[#allocation2 + $0x18] sm:$0xff] }
  0x9f   : > { %v722_v40 = vpop.permute.xlu0 %721 }
  0xa0   : > { %v724_v46 = vunpack.i.h.bf16 %v722_v40  ;;  %v723_v48 = vunpack.i.l.bf16 %v722_v40  ;;  %v427_v40 = vld [vmem:[#allocation2 + $0x30] sm:$0xff] }
  0xa2   : > { %v396_v58 = vsel %vm394_vm4, %v913_v32, %v724_v46  ;;  %v395_v60 = vsel %vm394_vm4, %v924_v44, %v723_v48  ;;  %v428_v46 = vld [vmem:[#allocation2 + $0x38] sm:$0xff] }
  0xa4   : > { %v742_v41 = vpop.permute.xlu1 %741 }
  0xa5   : > { %v744_v49 = vunpack.i.h.bf16 %v742_v41  ;;  %v743_v54 = vunpack.i.l.bf16 %v742_v41  ;;  %v425_v41 = vld [vmem:[#allocation2 + $0x20] sm:$0xff] }
  0xa7   : > { %v402_v61 = vsel %vm394_vm4, %v938_v59, %v744_v49  ;;  %v401_v44 = vsel %vm394_vm4, %v936_v57, %v743_v54  ;;  %v421_v49 = vld [vmem:[#allocation2] sm:$0xff] }
  0xa8   : > { %v727_v42 = vpop.permute.xlu0 %726  ;;  %v747_v43 = vpop.permute.xlu1 %746 }
  0xa9   : > { %v729_v38 = vunpack.i.h.bf16 %v727_v42  ;;  %v728_v47 = vunpack.i.l.bf16 %v727_v42  ;;  %v749_v51 = vunpack.i.h.bf16 %v747_v43  ;;  %v748_v52 = vunpack.i.l.bf16 %v747_v43  ;;  %v423_v42 = vld [vmem:[#allocation2 + $0x10] sm:$0xff] }
  0xab   : > { %v400_v0 = vsel %vm394_vm4, %v949_v8, %v729_v38  ;;  %v399_v1 = vsel %vm394_vm4, %v899_v16, %v728_v47 }
  0xac   : > { %v732_v45 = vpop.permute.xlu0 %731  ;;  %v757_v50 = vpop.permute.xlu1 %756  ;;  %v408_v32 = vsel %vm403_vm5, %v399_v1, %v748_v52  ;;  %v409_v6 = vsel %vm403_vm5, %v400_v0, %v749_v51  ;;  %v426_v51 = vld [vmem:[#allocation2 + $0x28] sm:$0xff] }
  0xad   : > { %v733_v55 = vunpack.i.l.bf16 %v732_v45  ;;  %v734_v62 = vunpack.i.h.bf16 %v732_v45  ;;  %v759_v4 = vunpack.i.h.bf16 %v757_v50  ;;  %v758_v5 = vunpack.i.l.bf16 %v757_v50 }
  0xaf   : > { %v404_v7 = vsel %vm403_vm5, %v395_v60, %v733_v55  ;;  %v405_v13 = vsel %vm403_vm5, %v396_v58, %v734_v62  ;;  %v410_v21 = vsel %vm403_vm5, %v401_v44, %v758_v5  ;;  %v411_v57 = vsel %vm403_vm5, %v402_v61, %v759_v4  ;;  %v422_v58 = vld [vmem:[#allocation2 + $0x8] sm:$0xff] }
  0xb0   : > { %v752_v56 = vpop.permute.xlu0 %751  ;;  %v767_v63 = vpop.permute.xlu1 %766 }
  0xb1   : > { %v769_v2 = vunpack.i.h.bf16 %v767_v63  ;;  %v768_v3 = vunpack.i.l.bf16 %v767_v63  ;;  %v754_v15 = vunpack.i.h.bf16 %v752_v56  ;;  %v753_v17 = vunpack.i.l.bf16 %v752_v56 }
  0xb3   : > { %v417_v9 = vsel %vm412_vm6, %v408_v32, %v768_v3  ;;  %v418_v8 = vsel %vm412_vm6, %v409_v6, %v769_v2  ;;  %v407_v35 = vsel %vm403_vm5, %v398_v24, %v754_v15  ;;  %v406_v36 = vsel %vm403_vm5, %v397_v30, %v753_v17 }
  0xb4   : > { %v762_v59 = vpop.permute.xlu0 %761  ;;  %v777_v12 = vpop.permute.xlu1 %776  ;;  %v431_v14 = vpack.c.bf16 %v418_v8, %v417_v9 }
  0xb5   : > { %v764_v10 = vunpack.i.h.bf16 %v762_v59  ;;  %v763_v16 = vunpack.i.l.bf16 %v762_v59  ;;  %v779_v18 = vunpack.i.h.bf16 %v777_v12  ;;  %v778_v19 = vunpack.i.l.bf16 %v777_v12 }
  0xb6   : > { %668 = vmatprep.mubr.msk.bf16.mxu1 %vm436_vm7, %v431_v14 }
  0xb7   : > { %v413_v22 = vsel %vm412_vm6, %v404_v7, %v763_v16  ;;  %v414_v23 = vsel %vm412_vm6, %v405_v13, %v764_v10  ;;  %v419_v25 = vsel %vm412_vm6, %v410_v21, %v778_v19  ;;  %v420_v26 = vsel %vm412_vm6, %v411_v57, %v779_v18 }
  0xb8   : > { %v772_v27 = vpop.permute.xlu0 %771  ;;  %v429_v28 = vpack.c.bf16 %v414_v23, %v413_v22  ;;  %v432_v31 = vpack.c.bf16 %v420_v26, %v419_v25 }
  0xb9   : > { %v774_v33 = vunpack.i.h.bf16 %v772_v27  ;;  %v773_v34 = vunpack.i.l.bf16 %v772_v27 }
  0xba   : > { %664 = vmatprep.mubr.msk.bf16.mxu0 %vm436_vm7, %v429_v28  ;;  %669 = vmatmul.mubr.msk.bf16.vlgmr.msra.gmra.mxu1 %vm436_vm7, %v432_v31 }
  0xbb   : > { %v415_v11 = vsel %vm412_vm6, %v406_v36, %v773_v34  ;;  %v416_v37 = vsel %vm412_vm6, %v407_v35, %v774_v33 }
  0xbc   : > { %v430_v39 = vpack.c.bf16 %v416_v37, %v415_v11 }
  0xbe   : > { %665 = vmatmul.mubr.msk.bf16.vlgmr.msra.gmra.mxu0 %vm436_vm7, %v430_v39 }
 0x17a   : > { %v670_v20 = vpop.f32.mrf.mxu1 }
 0x17b   : > { %v520_v43 = vadd.f32 %v670_v20, %v427_v40 }
 0x17c   : > { %v499_v45 = vpop.f32.mrf.mxu1 }
 0x17d   : > { %528 = vst.msk [vmem:[#allocation2 + $0x30] sm:$0xff] %vm403_vm5, %v520_v43  ;;  %v518_v50 = vadd.f32 %v499_v45, %v425_v41 }
 0x17e   : > { %v666_v48 = vpop.f32.mrf.mxu0  ;;  %v671_v47 = vpop.f32.mrf.mxu1 }
 0x17f   : > { %v516_v38 = vadd.f32 %v666_v48, %v423_v42  ;;  %526 = vst.msk [vmem:[#allocation2 + $0x20] sm:$0xff] %vm403_vm5, %v518_v50  ;;  %v521_v53 = vadd.f32 %v671_v47, %v428_v46 }
 0x180   : > { %v483_v52 = vpop.f32.mrf.mxu0  ;;  %v502_v55 = vpop.f32.mrf.mxu1 }
 0x181   : > { %524 = vst.msk [vmem:[#allocation2 + $0x10] sm:$0xff] %vm403_vm5, %v516_v38  ;;  %v514_v54 = vadd.f32 %v483_v52, %v421_v49  ;;  %529 = vst.msk [vmem:[#allocation2 + $0x38] sm:$0xff] %vm403_vm5, %v521_v53  ;;  %v519_v60 = vadd.f32 %v502_v55, %v426_v51 }
 0x182   : > { %v667_v56 = vpop.f32.mrf.mxu0 }
 0x183   : > { %522 = vst.msk [vmem:[#allocation2] sm:$0xff] %vm403_vm5, %v514_v54  ;;  %v517_v61 = vadd.f32 %v667_v56, %v424_v29  ;;  %527 = vst.msk [vmem:[#allocation2 + $0x28] sm:$0xff] %vm403_vm5, %v519_v60  ;;  %533 = sbr.rel (%p652_p8) target bundleno = 400 (0x190), region = 36 }
 0x184   : > { %v486_v62 = vpop.f32.mrf.mxu0 }
 0x185   : > { %525 = vst.msk [vmem:[#allocation2 + $0x18] sm:$0xff] %vm403_vm5, %v517_v61  ;;  %v515_v63 = vadd.f32 %v486_v62, %v422_v58 }
 0x187   : > { %523 = vst.msk [vmem:[#allocation2 + $0x8] sm:$0xff] %vm403_vm5, %v515_v63 }
 0x188   : > { %v536_v2 = vld [vmem:[#allocation2 + $0x10] sm:$0xff]  ;;  %v538_v4 = vld [vmem:[#allocation2 + $0x20] sm:$0xff]  ;;  %v541_v6 = vld [vmem:[#allocation2 + $0x38] sm:$0xff] }
 0x189   : > { %544 = vst.msk [vmem:[%s881_s27 + $0x10] sm:$0xff] %vm403_vm5, %v536_v2  ;;  %546 = vst.msk [vmem:[%s881_s27 + $0x20] sm:$0xff] %vm403_vm5, %v538_v4  ;;  %v540_v32 = vld [vmem:[#allocation2 + $0x30] sm:$0xff] }
 0x18a   : > { %v534_v0 = vld [vmem:[#allocation2] sm:$0xff]  ;;  %v539_v5 = vld [vmem:[#allocation2 + $0x28] sm:$0xff]  ;;  %548 = vst.msk [vmem:[%s881_s27 + $0x30] sm:$0xff] %vm403_vm5, %v540_v32  ;;  %549 = vst.msk [vmem:[%s881_s27 + $0x38] sm:$0xff] %vm403_vm5, %v541_v6 }
 0x18b   : > { %542 = vst.msk [vmem:[%s881_s27] sm:$0xff] %vm403_vm5, %v534_v0  ;;  %547 = vst.msk [vmem:[%s881_s27 + $0x28] sm:$0xff] %vm403_vm5, %v539_v5 }
 0x18c   : > { %v537_v3 = vld [vmem:[#allocation2 + $0x18] sm:$0xff] }
 0x18d   : > { %545 = vst.msk [vmem:[%s881_s27 + $0x18] sm:$0xff] %vm403_vm5, %v537_v3 }
 0x18e   : > { %v535_v1 = vld [vmem:[#allocation2 + $0x8] sm:$0xff] }
 0x18f   : > { %543 = vst.msk [vmem:[%s881_s27 + $0x8] sm:$0xff] %vm403_vm5, %v535_v1 }
 0x190 PF: > { %s12_s13 = sadd.s32 1, %s818_s13   ;;  %s1048_s9 = smov %s810_s11 }
 0x191   : > { %p9_p9 = scmp.ge.s32.totalorder %s12_s13, 10   ;;  %s1049_s10 = smov %s814_s12 }
 0x192   : > { %s1050_s11 = smov %s1053_s14  ;;  %s1051_s12 = smov %s1057_s15 }
 0x193   :  { %11 = sbr.rel (!%p9_p9) target bundleno = 3 (0x3), region = 69 }

// kernel: unet_block_innermost.3
= control target key start
LH: loop header
LB: loop body
LE: loop exit
PB: predicated region body
PF: predicated region fallthrough
CT: control target
= control target key end

     0   :  { %s1737_s12 = smov 0   ;;  %s1739_s13 = smov 0   ;;  %s2369_s0 = inlined_call_operand.vmem [shape: f32[2,10,10,8], index: 0, kind: input, shape index: {}]   ;;  %s2370_s1 = inlined_call_operand.vmem [shape: f32[4,32,4], index: 1, kind: input, shape index: {}]   ;;  %s2371_s2 = inlined_call_operand.vmem [shape: f32[4,2,8,8,4], index: 2, kind: output, shape index: {0}]   ;;  %s2372_s3 = inlined_call_operand.vmem [shape: f32[2,2,4], index: 3, kind: output, shape index: {1}]  }
   0x1   :  { %s1741_s14 = smov 0  }
   0x2 LB: > { %s1750_s15 = sadd.s32 4294967295, %s1712_s14   ;;  %s1752_s16 = sadd.s32 1, %s1712_s14   ;;  %s1712_s14 = sphi %s1741_s14, %s2376_s14   ;;  %s1708_s13 = sphi %s1739_s13, %s2375_s13   ;;  %s1704_s12 = sphi %s1737_s12, %s2374_s12  }
   0x3   : > { %s65_s17 = ssub.s32 %s1712_s14, %s1752_s16  ;;  %s68_s18 = sadd.s32 1, %s1708_s13 }
   0x4   : > { %p66_p0 = scmp.eq.s32.totalorder %s65_s17, 0  ;;  %p78_p1 = scmp.ne.s32.totalorder %s1708_s13, %s1704_s12 }
   0x5   : > { %p79_p2 = scmp.eq.s32.totalorder %s1750_s15, 1  ;;  %p1393_p3 = scmp.ge.s32.totalorder %s1712_s14, 1 }
   0x6   : > { %s1760_s19 = scalar_select %p66_p0, %s1708_s13, %s68_s18  }
   0x7   : > { %p1762_p4 = por %p79_p2, %p78_p1  ;;  %p140_p5 = scmp.lt.s32.totalorder %s1712_s14, 3 }
   0x9   : > { %p141_p6 = pnand %p1393_p3, %p140_p5 }
   0xa   : > { %p167_p7 = scmp.lt.s32.totalorder (!%p141_p6), %s1750_s15, 1  ;;  %s1714_s26 = smov (!%p141_p6), 16  }
   0xb   : > { %144 = sbr.rel (%p141_p6) target bundleno = 439 (0x1b7), region = 28  ;;  %s1715_s27 = smov (!%p141_p6), 8  }
   0xc   : > { %s1716_s9 = smov (!%p141_p6), 24   ;;  %s158_s18 = sand.u32 (!%p141_p6), 1, %s1704_s12  }
  0x10   : > { %s1768_s21 = scalar_select %p167_p7, %s1750_s15, 1  ;;  %vm233_vm0 = vcmask 1046528   ;;  %v368_v51 = vld [vmem:[%s2370_s1 + $0x10] sm:$0xff]  ;;  %v369_v52 = vld [vmem:[%s2370_s1 + $0x18] sm:$0xff]  ;;  %v366_v63 = vld [vmem:[%s2370_s1] sm:$0xff]  ;;  %vm335_vm1 = vcmask 64512  }
  0x11   : > { %v1403_v57 = vld [vmem:[%s2370_s1 + $0x30] sm:$0xff]  ;;  %v1404_v58 = vld [vmem:[%s2370_s1 + $0x38] sm:$0xff]  ;;  %vm344_vm2 = vcmask 130048   ;;  %vm353_vm3 = vcmask 195584   ;;  %vm372_vm4 = vcmask 261120   ;;  %vm450_vm5 = vcmask 31744  }
  0x12   : > { %s1527_s22 = smul.u32 160, %s1768_s21  ;;  %s1396_s12 = sshll.u32 %s1768_s21, 1  ;;  %vm1137_vm6 = vcmask 1040384   ;;  %vm1139_vm7 = vcmask 25600  }
  0x13   : > { %s175_s29 = scalar_lea.vmem %s2372_s3, %s1396_s12  ;;  %s1454_s21 = sshll.u32 (%p1762_p4), %s1750_s15, 6 }
  0x14   : > { %s1774_s25 = scalar_lea.vmem %s2369_s0, %s1527_s22  ;;  %s1394_s22 = sshll.u32 %s158_s18, 8 }
  0x15   : > { %v183_v0 = vld [vmem:[%s1774_s25 + $0x30] sm:$0xff]  ;;  %v185_v1 = vld [vmem:[%s1774_s25 + $0x40] sm:$0xff]  ;;  %v180_v7 = vld [vmem:[%s1774_s25 + $0x18] sm:$0x3]  ;;  %s2115_s23 = scalar_lea.vmem [#allocation2], %s1394_s22  ;;  %s2296_s5 = scalar_lea.vmem (%p1762_p4), %s2371_s2, %s1454_s21 }
  0x16   : > { %v179_v2 = vld [vmem:[%s1774_s25 + $0x10] sm:$0xff]  ;;  %v1779_v3 = vmax.f32 %v183_v0, 0.0  ;;  %v1781_v4 = vmax.f32 %v185_v1, 0.0  ;;  %v181_v5 = vld [vmem:[%s1774_s25 + $0x20] sm:$0xff]  ;;  %v182_v9 = vld [vmem:[%s1774_s25 + $0x28] sm:$0x3]  ;;  %v371_v0 = vpack.c.bf16 %v369_v52, %v368_v51 }
  0x17   : > { %v1784_v6 = vmax.f32 %v179_v2, 0.0  ;;  %v1787_v8 = vmax.f32 %v181_v5, 0.0  ;;  %v1790_v10 = vmax.f32 %v180_v7, 0.0  ;;  %v1793_v11 = vld [vmem:[%s1774_s25 + $0x8] sm:$0x3]  ;;  %v1797_v13 = vmax.f32 %v182_v9, 0.0 }
  0x18   : > { %v1565_v12 = vpack.i.bf16 %v1781_v4, %v1779_v3  ;;  %v198_v14 = vmax.f32 %v1793_v11, 0.0  ;;  %v184_v15 = vld [vmem:[%s1774_s25 + $0x38] sm:$0x3]  ;;  %v243_v16 = vrot.slane %v1779_v3, 1  ;;  %v1803_v17 = vld [vmem:[%s1774_s25] sm:$0xff]  ;;  %v187_v39 = vld [vmem:[%s1774_s25 + $0x50] sm:$0xff]  ;;  %v665_v9 = vpack.c.bf16 %v1404_v58, %v1403_v57  ;;  %1479 = vmatprep.subr.bf16.mxu0 %v371_v0 }
  0x19   : > { %v1555_v18 = vpack.i.bf16 %v1787_v8, %v1784_v6  ;;  %v1808_v19 = vrot.slane %v1790_v10, 1  ;;  %v1810_v20 = vmax.f32 %v184_v15, 0.0  ;;  %v240_v21 = vrot.slane %v1787_v8, 1  ;;  %v186_v30 = vld [vmem:[%s1774_s25 + $0x48] sm:$0x3]  ;;  %v189_v46 = vld [vmem:[%s1774_s25 + $0x60] sm:$0xff]  ;;  %1480 = vmatpush3.bf16.msra.mxu0 %v371_v0 }
  0x1a   : > { %1566 = vrot.lane.b32.xlu0 %v1565_v12, %s1714_s26  ;;  %v235_v22 = vrot.slane %v198_v14, 1  ;;  %v241_v23 = vrot.slane %v1797_v13, 1  ;;  %v1560_v24 = vpack.i.bf16 %v1797_v13, %v1790_v10  ;;  %v237_v26 = vrot.slane %v1784_v6, 1  ;;  %v188_v38 = vld [vmem:[%s1774_s25 + $0x58] sm:$0x3]  ;;  %v191_v48 = vld [vmem:[%s1774_s25 + $0x70] sm:$0xff]  ;;  %1491 = vmatprep.subr.bf16.mxu1 %v665_v9 }
  0x1b   : > { %1556 = vrot.lane.b32.xlu1 %v1555_v18, %s1714_s26  ;;  %v1821_v25 = vrot.slane %v1810_v20, 1  ;;  %v197_v27 = vmax.f32 %v1803_v17, 0.0  ;;  %v1838_v37 = vmax.f32 %v186_v30, 0.0  ;;  %v1843_v41 = vmax.f32 %v188_v38, 0.0  ;;  %v190_v47 = vld [vmem:[%s1774_s25 + $0x68] sm:$0x3]  ;;  %1492 = vmatpush3.bf16.msra.mxu1 %v665_v9 }
  0x1c   : > { %v1570_v28 = vpack.i.bf16 %v1808_v19, %v235_v22  ;;  %v242_v29 = vsel %vm233_vm0, %v240_v21, %v241_v23  ;;  %v239_v35 = vsel %vm233_vm0, %v237_v26, %v1808_v19  ;;  %v1845_v42 = vmax.f32 %v187_v39, 0.0  ;;  %v192_v49 = vld [vmem:[%s1774_s25 + $0x78] sm:$0x3]  ;;  %v367_v1 = vld [vmem:[%s2370_s1 + $0x8] sm:$0xff]  ;;  %v1401_v2 = vld [vmem:[%s2370_s1 + $0x20] sm:$0xff] }
  0x1d   : > { %v245_v31 = vsel %vm233_vm0, %v243_v16, %v1821_v25  ;;  %v234_v32 = vrot.slane %v197_v27, 1  ;;  %v1575_v33 = vpack.i.bf16 %v1821_v25, %v241_v23  ;;  %v1595_v43 = vpack.i.bf16 %v242_v29, %v239_v35  ;;  %v1402_v5 = vld [vmem:[%s2370_s1 + $0x28] sm:$0xff]  ;;  %v1419_v38 = vld [vmem:[%s2370_s1 + $0x50] sm:$0xff]  ;;  %v1420_v39 = vld [vmem:[%s2370_s1 + $0x58] sm:$0xff] }
  0x1e   : > { %1571 = vrot.lane.b32.xlu0 %v1570_v28, %s1715_s27  ;;  %v1590_v34 = vpack.i.bf16 %v245_v31, %v242_v29  ;;  %v247_v44 = vrot.slane %v1838_v37, 1  ;;  %v246_v45 = vrot.slane %v1781_v4, 1  ;;  %v1585_v50 = vpack.i.bf16 %v1838_v37, %v1810_v20  ;;  %v196_v51 = vld [vmem:[%s1774_s25 + $0x98] sm:$0x3] }
  0x1f   : > { %1561 = vrot.lane.b32.xlu1 %v1560_v24, %s1714_s26  ;;  %v236_v36 = vsel %vm233_vm0, %v234_v32, %v235_v22  ;;  %v1864_v53 = vrot.slane %v1843_v41, 1  ;;  %v249_v54 = vrot.slane %v1845_v42, 1  ;;  %v1867_v55 = vmax.f32 %v189_v46, 0.0  ;;  %v194_v32 = vld [vmem:[%s1774_s25 + $0x88] sm:$0x3] }
  0x20   : > { %v1580_v40 = vpack.i.bf16 %v239_v35, %v236_v36  ;;  %v1869_v56 = vmax.f32 %v190_v47, 0.0  ;;  %v1600_v59 = vpack.i.bf16 %v241_v23, %v1808_v19  ;;  %v248_v60 = vsel %vm233_vm0, %v246_v45, %v247_v44  ;;  %v1436_v45 = vld [vmem:[%s2370_s1 + $0x78] sm:$0xff] }
  0x21   : > { %v1880_v61 = vmax.f32 %v191_v48, 0.0  ;;  %v1882_v62 = vmax.f32 %v192_v49, 0.0  ;;  %v1610_v7 = vpack.i.bf16 %v247_v44, %v1821_v25  ;;  %v1605_v12 = vpack.i.bf16 %v248_v60, %v245_v31  ;;  %v193_v31 = vld [vmem:[%s1774_s25 + $0x80] sm:$0xff] }
  0x22   : > { %1576 = vrot.lane.b32.xlu0 %v1575_v33, %s1715_s27  ;;  %v251_v15 = vsel %vm233_vm0, %v249_v54, %v1864_v53  ;;  %v252_v16 = vrot.slane %v1867_v55, 1  ;;  %v253_v18 = vrot.slane %v1869_v56, 1  ;;  %v370_v22 = vpack.c.bf16 %v367_v1, %v366_v63 }
  0x23   : > { %1591 = vrot.lane.b32.xlu1 %v1590_v34, %s1715_s27  ;;  %v255_v19 = vrot.slane %v1880_v61, 1  ;;  %v256_v21 = vrot.slane %v1882_v62, 1  ;;  %v664_v23 = vpack.c.bf16 %v1402_v5, %v1401_v2  ;;  %v1615_v24 = vpack.i.bf16 %v251_v15, %v248_v60 }
  0x24   : > { %1481 = vmatprep.subr.bf16.mxu0 %v370_v22  ;;  %v1620_v25 = vpack.i.bf16 %v1864_v53, %v247_v44  ;;  %v254_v26 = vsel %vm233_vm0, %v252_v16, %v253_v18  ;;  %v1630_v30 = vpack.i.bf16 %v1867_v55, %v1845_v42  ;;  %v1917_v34 = vmax.f32 %v193_v31, 0.0 }
  0x25   : > { %1493 = vmatprep.subr.bf16.mxu1 %v664_v23  ;;  %v257_v28 = vsel %vm233_vm0, %v255_v19, %v256_v21  ;;  %1482 = vmatpush3.bf16.msra.mxu0 %v370_v22  ;;  %v1635_v33 = vpack.i.bf16 %v256_v21, %v253_v18  ;;  %v1640_v35 = vpack.i.bf16 %v1869_v56, %v1843_v41  ;;  %v1922_v36 = vmax.f32 %v194_v32, 0.0 }
  0x26   : > { %1581 = vrot.lane.b32.xlu0 %v1580_v40, %s1715_s27  ;;  %1494 = vmatpush3.bf16.msra.mxu1 %v664_v23  ;;  %v1625_v29 = vpack.i.bf16 %v257_v28, %v254_v26  ;;  %v1435_v40 = vld [vmem:[%s2370_s1 + $0x70] sm:$0xff]  ;;  %v1936_v44 = vpack.c.bf16 %v1420_v39, %v1419_v38  ;;  %v1650_v46 = vpack.i.bf16 %v254_v26, %v251_v15  ;;  %v308_v48 = vrot.slane %v1917_v34, 1 }
  0x27   : > { %1596 = vrot.lane.b32.xlu1 %v1595_v43, %s1716_s9  ;;  %v1645_v43 = vpack.i.bf16 %v1917_v34, %v1880_v61  ;;  %v309_v47 = vrot.slane %v1922_v36, 1  ;;  %v1944_v49 = vpack.c.bf16 %v1436_v45, %v1435_v40  ;;  %v1655_v52 = vpack.i.bf16 %v1922_v36, %v1882_v62 }
  0x28   : > { %1503 = vmatprep.subr.bf16.mxu0 %v1936_v44  ;;  %v1660_v54 = vpack.i.bf16 %v253_v18, %v1864_v53 }
  0x29   : > { %1515 = vmatprep.subr.bf16.mxu1 %v1944_v49  ;;  %v310_v57 = vsel %vm233_vm0, %v308_v48, %v309_v47  ;;  %v1670_v63 = vpack.i.bf16 %v309_v47, %v256_v21 }
  0x2a   : > { %1586 = vrot.lane.b32.xlu0 %v1585_v50, %s1714_s26  ;;  %v195_v50 = vld [vmem:[%s1774_s25 + $0x90] sm:$0xff]  ;;  %v1665_v60 = vpack.i.bf16 %v310_v57, %v257_v28  ;;  %v1675_v2 = vpack.i.bf16 %v309_v47, %v310_v57 }
  0x2b   : > { %1601 = vrot.lane.b32.xlu1 %v1600_v59, %s1716_s9  ;;  %v215_v58 = vmax.f32 %v195_v50, 0.0  ;;  %v216_v59 = vmax.f32 %v196_v51, 0.0 }
  0x2d   : > { %v812_v0 = vrot.slane %v215_v58, 1  ;;  %v813_v1 = vrot.slane %v216_v59, 1  ;;  %v1680_v5 = vpack.i.bf16 %v216_v59, %v215_v58 }
  0x2e   : > { %1606 = vrot.lane.b32.xlu0 %v1605_v12, %s1716_s9 }
  0x2f   : > { %1611 = vrot.lane.b32.xlu1 %v1610_v7, %s1716_s9  ;;  %v814_v53 = vsel %vm233_vm0, %v812_v0, %v813_v1 }
  0x30   : > { %v1685_v7 = vpack.i.bf16 %v813_v1, %v814_v53 }
  0x32   : > { %1616 = vrot.lane.b32.xlu0 %v1615_v24, %s1715_s27 }
  0x33   : > { %1621 = vrot.lane.b32.xlu1 %v1620_v25, %s1715_s27 }
  0x36   : > { %1626 = vrot.lane.b32.xlu0 %v1625_v29, %s1715_s27 }
  0x37   : > { %1631 = vrot.lane.b32.xlu1 %v1630_v30, %s1714_s26 }
  0x3a   : > { %1636 = vrot.lane.b32.xlu0 %v1635_v33, %s1715_s27 }
  0x3b   : > { %1641 = vrot.lane.b32.xlu1 %v1640_v35, %s1714_s26 }
  0x3e   : > { %1646 = vrot.lane.b32.xlu0 %v1645_v43, %s1714_s26 }
  0x3f   : > { %1651 = vrot.lane.b32.xlu1 %v1650_v46, %s1716_s9 }
  0x42   : > { %1656 = vrot.lane.b32.xlu0 %v1655_v52, %s1714_s26 }
  0x43   : > { %1661 = vrot.lane.b32.xlu1 %v1660_v54, %s1716_s9 }
  0x46   : > { %1666 = vrot.lane.b32.xlu0 %v1665_v60, %s1716_s9 }
  0x47   : > { %1671 = vrot.lane.b32.xlu1 %v1670_v63, %s1716_s9 }
  0x4a   : > { %1676 = vrot.lane.b32.xlu0 %v1675_v2, %s1715_s27 }
  0x4b   : > { %1681 = vrot.lane.b32.xlu1 %v1680_v5, %s1714_s26 }
  0x4e   : > { %1686 = vrot.lane.b32.xlu0 %v1685_v7, %s1716_s9 }
  0x8c   : > { %v1567_v9 = vpop.permute.xlu0 %1566 }
  0x8d   : > { %v1557_v12 = vpop.permute.xlu1 %1556  ;;  %v1569_v24 = vunpack.i.h.bf16 %v1567_v9  ;;  %v1568_v26 = vunpack.i.l.bf16 %v1567_v9 }
  0x8e   : > { %v1559_v28 = vunpack.i.h.bf16 %v1557_v12  ;;  %v1558_v32 = vunpack.i.l.bf16 %v1557_v12 }
  0x90   : > { %v1572_v15 = vpop.permute.xlu0 %1571 }
  0x91   : > { %v1562_v16 = vpop.permute.xlu1 %1561  ;;  %v1573_v18 = vunpack.i.l.bf16 %v1572_v15  ;;  %v1574_v23 = vunpack.i.h.bf16 %v1572_v15 }
  0x92   : > { %v1563_v22 = vunpack.i.l.bf16 %v1562_v16  ;;  %v1564_v33 = vunpack.i.h.bf16 %v1562_v16 }
  0x93   : > { %v583_v25 = vsel %vm335_vm1, %v198_v14, %v1573_v18  ;;  %v584_v40 = vsel %vm335_vm1, %v1790_v10, %v1574_v23 }
  0x94   : > { %v1577_v19 = vpop.permute.xlu0 %1576  ;;  %v591_v11 = vsel %vm344_vm2, %v583_v25, %v1563_v22  ;;  %v592_v58 = vsel %vm344_vm2, %v584_v40, %v1564_v33 }
  0x95   : > { %v1592_v21 = vpop.permute.xlu1 %1591  ;;  %v1579_v43 = vunpack.i.h.bf16 %v1577_v19  ;;  %v1578_v45 = vunpack.i.l.bf16 %v1577_v19 }
  0x96   : > { %v1594_v29 = vunpack.i.h.bf16 %v1592_v21  ;;  %v1593_v30 = vunpack.i.l.bf16 %v1592_v21 }
  0x97   : > { %v585_v0 = vsel %vm335_vm1, %v1797_v13, %v1578_v45  ;;  %v1433_v45 = vld [vmem:[%s2370_s1 + $0x60] sm:$0xff] }
  0x98   : > { %v1582_v31 = vpop.permute.xlu0 %1581  ;;  %v339_v50 = vsel %vm335_vm1, %v1779_v3, %v1594_v29  ;;  %v338_v51 = vsel %vm335_vm1, %v1787_v8, %v1593_v30  ;;  %v586_v8 = vsel %vm335_vm1, %v1810_v20, %v1579_v43 }
  0x99   : > { %v1597_v35 = vpop.permute.xlu1 %1596  ;;  %v1584_v38 = vunpack.i.h.bf16 %v1582_v31  ;;  %v1583_v39 = vunpack.i.l.bf16 %v1582_v31  ;;  %v347_v1 = vsel %vm344_vm2, %v338_v51, %v1568_v26  ;;  %v348_v2 = vsel %vm344_vm2, %v339_v50, %v1569_v24 }
  0x9a   : > { %v1599_v14 = vunpack.i.h.bf16 %v1597_v35  ;;  %v1598_v46 = vunpack.i.l.bf16 %v1597_v35  ;;  %v1417_v35 = vld [vmem:[%s2370_s1 + $0x40] sm:$0xff] }
  0x9b   : > { %v337_v47 = vsel %vm335_vm1, %v1784_v6, %v1584_v38  ;;  %v336_v48 = vsel %vm335_vm1, %v197_v27, %v1583_v39  ;;  %v1418_v38 = vld [vmem:[%s2370_s1 + $0x48] sm:$0xff] }
  0x9c   : > { %v1587_v10 = vpop.permute.xlu0 %1586  ;;  %v345_v52 = vsel %vm344_vm2, %v336_v48, %v1558_v32  ;;  %v346_v54 = vsel %vm344_vm2, %v337_v47, %v1559_v28  ;;  %v830_v50 = vpack.c.bf16 %v1418_v38, %v1417_v35 }
  0x9d   : > { %v1602_v57 = vpop.permute.xlu1 %1601  ;;  %v1589_v59 = vunpack.i.h.bf16 %v1587_v10  ;;  %v354_v6 = vsel %vm353_vm3, %v345_v52, %v1598_v46  ;;  %v1984_v17 = vsel %vm353_vm3, %v346_v54, %v1599_v14  ;;  %v1588_v3 = vunpack.i.l.bf16 %v1587_v10 }
  0x9e   : > { %v1604_v27 = vunpack.i.h.bf16 %v1602_v57  ;;  %v1603_v60 = vunpack.i.l.bf16 %v1602_v57  ;;  %v362_v63 = vpack.c.bf16 %v1984_v17, %v354_v6  ;;  %v623_v9 = vrot.slane %v354_v6, 1 }
  0x9f   : > { %v626_v12 = vrot.slane %v1984_v17, 1  ;;  %v594_v13 = vsel %vm344_vm2, %v586_v8, %v1589_v59  ;;  %v593_v21 = vsel %vm344_vm2, %v585_v0, %v1588_v3 }
  0xa0   : > { %v599_v5 = vsel %vm353_vm3, %v591_v11, %v1603_v60  ;;  %v600_v53 = vsel %vm353_vm3, %v592_v58, %v1604_v27  ;;  %v1607_v7 = vpop.permute.xlu0 %1606  ;;  %1483 = vmatprep.mubr.msk.bf16.mxu0 %vm372_vm4, %v362_v63  ;;  %v1434_v11 = vld [vmem:[%s2370_s1 + $0x68] sm:$0xff] }
  0xa1   : > { %v624_v15 = vrot.slane %v599_v5, 1  ;;  %v627_v16 = vrot.slane %v600_v53, 1  ;;  %v1612_v20 = vpop.permute.xlu1 %1611  ;;  %v1609_v18 = vunpack.i.h.bf16 %v1607_v7  ;;  %v1608_v19 = vunpack.i.l.bf16 %v1607_v7 }
  0xa2   : > { %v1614_v22 = vunpack.i.h.bf16 %v1612_v20  ;;  %v1613_v23 = vunpack.i.l.bf16 %v1612_v20  ;;  %v997_v52 = vpack.c.bf16 %v1434_v11, %v1433_v45 }
  0xa3   : > { %v2000_v24 = vsel %vm353_vm3, %v348_v2, %v1609_v18  ;;  %v2003_v25 = vsel %vm353_vm3, %v347_v1, %v1608_v19  ;;  %v625_v26 = vsel %vm233_vm0, %v623_v9, %v624_v15  ;;  %v2007_v28 = vsel %vm233_vm0, %v626_v12, %v627_v16 }
  0xa4   : > { %v601_v29 = vsel %vm353_vm3, %v593_v21, %v1613_v23  ;;  %v602_v30 = vsel %vm353_vm3, %v594_v13, %v1614_v22  ;;  %v632_v31 = vrot.slane %v2000_v24, 1  ;;  %v629_v32 = vrot.slane %v2003_v25, 1  ;;  %v1617_v33 = vpop.permute.xlu0 %1616 }
  0xa5   : > { %v630_v39 = vrot.slane %v601_v29, 1  ;;  %v633_v40 = vrot.slane %v602_v30, 1  ;;  %v1622_v43 = vpop.permute.xlu1 %1621  ;;  %v655_v14 = vpack.c.bf16 %v2007_v28, %v625_v26  ;;  %v363_v48 = vpack.c.bf16 %v2000_v24, %v2003_v25 }
  0xa6   : > { %v1624_v57 = vunpack.i.h.bf16 %v1622_v43  ;;  %v1619_v58 = vunpack.i.h.bf16 %v1617_v33  ;;  %v1618_v6 = vunpack.i.l.bf16 %v1617_v33  ;;  %v1623_v8 = vunpack.i.l.bf16 %v1622_v43 }
  0xa7   : > { %v2027_v46 = vsel %vm233_vm0, %v629_v32, %v630_v39  ;;  %v2030_v47 = vsel %vm233_vm0, %v632_v31, %v633_v40  ;;  %1495 = vmatprep.mubr.msk.bf16.mxu1 %vm372_vm4, %v655_v14  ;;  %1484 = vmatmul.mubr.msk.bf16.vlgmr.msra.gmra.mxu0 %vm372_vm4, %v363_v48 }
  0xa8   : > { %v656_v51 = vpack.c.bf16 %v2030_v47, %v2027_v46  ;;  %v1627_v10 = vpop.permute.xlu0 %1626  ;;  %1504 = vmatpush3.bf16.msra.mxu0 %v1936_v44  ;;  %v588_v63 = vsel %vm335_vm1, %v1843_v41, %v1624_v57  ;;  %v341_v44 = vsel %vm335_vm1, %v1845_v42, %v1619_v58  ;;  %v340_v1 = vsel %vm335_vm1, %v1781_v4, %v1618_v6 }
  0xa9   : > { %v1632_v54 = vpop.permute.xlu1 %1631  ;;  %1505 = vmatprep.subr.bf16.mxu0 %v830_v50  ;;  %v1629_v0 = vunpack.i.h.bf16 %v1627_v10  ;;  %v1628_v2 = vunpack.i.l.bf16 %v1627_v10  ;;  %v587_v42 = vsel %vm335_vm1, %v1838_v37, %v1623_v8 }
  0xaa   : > { %1496 = vmatmul.mubr.msk.bf16.vlgmr.msra.gmra.mxu1 %vm372_vm4, %v656_v51  ;;  %v1634_v60 = vunpack.i.h.bf16 %v1632_v54  ;;  %v1633_v3 = vunpack.i.l.bf16 %v1632_v54 }
  0xab   : > { %1516 = vmatpush3.bf16.msra.mxu1 %v1944_v49  ;;  %v343_v4 = vsel %vm335_vm1, %v1880_v61, %v1629_v0  ;;  %v342_v23 = vsel %vm335_vm1, %v1867_v55, %v1628_v2 }
  0xac   : > { %v1637_v59 = vpop.permute.xlu0 %1636  ;;  %1517 = vmatprep.subr.bf16.mxu1 %v997_v52  ;;  %1506 = vmatpush3.bf16.msra.mxu0 %v830_v50  ;;  %v349_v9 = vsel %vm344_vm2, %v340_v1, %v1633_v3  ;;  %v350_v12 = vsel %vm344_vm2, %v341_v44, %v1634_v60 }
  0xad   : > { %v1642_v27 = vpop.permute.xlu1 %1641  ;;  %v1639_v5 = vunpack.i.h.bf16 %v1637_v59  ;;  %v1638_v53 = vunpack.i.l.bf16 %v1637_v59 }
  0xae   : > { %v1644_v41 = vunpack.i.h.bf16 %v1642_v27  ;;  %v1643_v20 = vunpack.i.l.bf16 %v1642_v27 }
  0xaf   : > { %1518 = vmatpush3.bf16.msra.mxu1 %v997_v52  ;;  %v590_v26 = vsel %vm335_vm1, %v1882_v62, %v1639_v5  ;;  %v589_v29 = vsel %vm335_vm1, %v1869_v56, %v1638_v53 }
  0xb0   : > { %v1647_v49 = vpop.permute.xlu0 %1646  ;;  %v595_v35 = vsel %vm344_vm2, %v587_v42, %v1643_v20  ;;  %v596_v38 = vsel %vm344_vm2, %v588_v63, %v1644_v41 }
  0xb1   : > { %v1652_v7 = vpop.permute.xlu1 %1651  ;;  %v1649_v18 = vunpack.i.h.bf16 %v1647_v49  ;;  %v1648_v19 = vunpack.i.l.bf16 %v1647_v49 }
  0xb2   : > { %v1654_v15 = vunpack.i.h.bf16 %v1652_v7  ;;  %v1653_v16 = vunpack.i.l.bf16 %v1652_v7 }
  0xb3   : > { %v351_v55 = vsel %vm344_vm2, %v342_v23, %v1648_v19  ;;  %v352_v39 = vsel %vm344_vm2, %v343_v4, %v1649_v18 }
  0xb4   : > { %v2054_v13 = vsel %vm353_vm3, %v349_v9, %v1653_v16  ;;  %v2057_v21 = vsel %vm353_vm3, %v350_v12, %v1654_v15  ;;  %v1657_v22 = vpop.permute.xlu0 %1656  ;;  %v821_v9 = vpack.c.bf16 %v2003_v25, %v1984_v17  ;;  %v988_v25 = vpack.c.bf16 %v2027_v46, %v2007_v28 }
  0xb5   : > { %v1662_v37 = vpop.permute.xlu1 %1661  ;;  %v1659_v30 = vunpack.i.h.bf16 %v1657_v22  ;;  %v1658_v32 = vunpack.i.l.bf16 %v1657_v22  ;;  %v364_v33 = vpack.c.bf16 %v2057_v21, %v2054_v13  ;;  %v635_v62 = vrot.slane %v2054_v13, 1 }
  0xb6   : > { %v1664_v31 = vunpack.i.h.bf16 %v1662_v37  ;;  %v1663_v61 = vunpack.i.l.bf16 %v1662_v37  ;;  %v638_v56 = vrot.slane %v2057_v21, 1 }
  0xb7   : > { %1487 = vmatprep.mubr.msk.bf16.mxu0 %vm372_vm4, %v364_v33  ;;  %v597_v10 = vsel %vm344_vm2, %v589_v29, %v1658_v32  ;;  %v598_v52 = vsel %vm344_vm2, %v590_v26, %v1659_v30 }
  0xb8   : > { %v603_v40 = vsel %vm353_vm3, %v595_v35, %v1663_v61  ;;  %v604_v43 = vsel %vm353_vm3, %v596_v38, %v1664_v31  ;;  %v1667_v45 = vpop.permute.xlu0 %1666 }
  0xb9   : > { %v636_v11 = vrot.slane %v603_v40, 1  ;;  %v639_v14 = vrot.slane %v604_v43, 1  ;;  %v1672_v48 = vpop.permute.xlu1 %1671  ;;  %v1669_v50 = vunpack.i.h.bf16 %v1667_v45  ;;  %v1668_v51 = vunpack.i.l.bf16 %v1667_v45 }
  0xba   : > { %v1674_v54 = vunpack.i.h.bf16 %v1672_v48  ;;  %v1673_v57 = vunpack.i.l.bf16 %v1672_v48 }
  0xbb   : > { %v360_v58 = vsel %vm353_vm3, %v351_v55, %v1668_v51  ;;  %v361_v59 = vsel %vm353_vm3, %v352_v39, %v1669_v50  ;;  %v637_v6 = vsel %vm233_vm0, %v635_v62, %v636_v11  ;;  %v640_v27 = vsel %vm233_vm0, %v638_v56, %v639_v14 }
  0xbc   : > { %v605_v60 = vsel %vm353_vm3, %v597_v10, %v1673_v57  ;;  %v606_v3 = vsel %vm353_vm3, %v598_v52, %v1674_v54  ;;  %v641_v63 = vrot.slane %v360_v58, 1  ;;  %v644_v8 = vrot.slane %v361_v59, 1  ;;  %v1677_v44 = vpop.permute.xlu0 %1676 }
  0xbd   : > { %v642_v0 = vrot.slane %v605_v60, 1  ;;  %v645_v49 = vrot.slane %v606_v3, 1  ;;  %v1679_v1 = vunpack.i.h.bf16 %v1677_v44  ;;  %v1678_v2 = vunpack.i.l.bf16 %v1677_v44  ;;  %v1682_v5 = vpop.permute.xlu1 %1681 }
  0xbe   : > { %v657_v53 = vpack.c.bf16 %v640_v27, %v637_v6  ;;  %v365_v7 = vpack.c.bf16 %v361_v59, %v360_v58  ;;  %v1684_v15 = vunpack.i.h.bf16 %v1682_v5  ;;  %v1683_v16 = vunpack.i.l.bf16 %v1682_v5 }
  0xbf   : > { %v643_v12 = vsel %vm233_vm0, %v641_v63, %v642_v0  ;;  %v646_v20 = vsel %vm233_vm0, %v644_v8, %v645_v49  ;;  %v979_v18 = vsel %vm335_vm1, %v1922_v36, %v1679_v1  ;;  %v818_v19 = vsel %vm335_vm1, %v1917_v34, %v1678_v2 }
  0xc0   : > { %1499 = vmatprep.mubr.msk.bf16.mxu1 %vm372_vm4, %v657_v53  ;;  %1488 = vmatmul.mubr.msk.bf16.gmra.mxu0 %vm372_vm4, %v365_v7  ;;  %v1687_v41 = vpop.permute.xlu0 %1686  ;;  %v658_v17 = vpack.c.bf16 %v646_v20, %v643_v12  ;;  %v819_v22 = vsel %vm344_vm2, %v818_v19, %v1683_v16  ;;  %v980_v23 = vsel %vm344_vm2, %v979_v18, %v1684_v15 }
  0xc1   : > { %1507 = vmatprep.mubr.msk.bf16.mxu0 %vm372_vm4, %v821_v9  ;;  %v1689_v42 = vunpack.i.h.bf16 %v1687_v41  ;;  %v1688_v4 = vunpack.i.l.bf16 %v1687_v41  ;;  %v822_v36 = vpack.c.bf16 %v2054_v13, %v2000_v24  ;;  %v823_v28 = vpack.c.bf16 %v360_v58, %v2057_v21 }
  0xc2   : > { %1500 = vmatmul.mubr.msk.bf16.gmra.mxu1 %vm372_vm4, %v658_v17  ;;  %v989_v46 = vpack.c.bf16 %v637_v6, %v2030_v47  ;;  %v990_v30 = vpack.c.bf16 %v643_v12, %v640_v27 }
  0xc3   : > { %1519 = vmatprep.mubr.msk.bf16.mxu1 %vm372_vm4, %v988_v25  ;;  %v820_v34 = vsel %vm353_vm3, %v819_v22, %v1688_v4  ;;  %v981_v26 = vsel %vm353_vm3, %v980_v23, %v1689_v42 }
  0xc4   : > { %v984_v29 = vrot.slane %v820_v34, 1  ;;  %v985_v37 = vrot.slane %v981_v26, 1  ;;  %v824_v24 = vpack.c.bf16 %v820_v34, %v361_v59 }
  0xc6   : > { %v986_v13 = vsel %vm233_vm0, %v984_v29, %v985_v37 }
  0xc7   : > { %v991_v31 = vpack.c.bf16 %v986_v13, %v646_v20 }
  0xc8   : > { %1508 = vmatmul.mubr.msk.bf16.vlgmr.msra.gmra.mxu0 %vm372_vm4, %v822_v36 }
  0xc9   : > { %1511 = vmatprep.mubr.msk.bf16.mxu0 %vm372_vm4, %v823_v28 }
  0xca   : > { %1520 = vmatmul.mubr.msk.bf16.vlgmr.msra.gmra.mxu1 %vm372_vm4, %v989_v46 }
  0xcb   : > { %1523 = vmatprep.mubr.msk.bf16.mxu1 %vm372_vm4, %v990_v30 }
  0xd0   : > { %1512 = vmatmul.mubr.msk.bf16.gmra.mxu0 %vm372_vm4, %v824_v24 }
  0xd2   : > { %1524 = vmatmul.mubr.msk.bf16.gmra.mxu1 %vm372_vm4, %v991_v31 }
 0x167   : > { %v1485_v47 = vpop.f32.mrf.mxu0 }
 0x168   : > { %453 = vst.msk [vmem:[%s2115_s23 + $0x10] sm:$0xff] %vm450_vm5, %v1485_v47  ;;  %v483_v50 = vmul.f32 %v1485_v47, %v1485_v47  ;;  %v462_v57 = vsel %vm450_vm5, %v1485_v47, 0.0 }
 0x169   : > { %v419_v61 = vpop.f32.mrf.mxu0 }
 0x16a   : > { %v1497_v21 = vpop.f32.mrf.mxu1  ;;  %451 = vst.msk [vmem:[%s2115_s23] sm:$0xff] %vm450_vm5, %v419_v61  ;;  %v481_v62 = vmul.f32 %v419_v61, %v419_v61  ;;  %v459_v43 = vsel %vm450_vm5, %v419_v61, 0.0  ;;  %v492_v3 = vsel %vm450_vm5, %v483_v50, 0.0 }
 0x16b   : > { %1411 = vst.msk [vmem:[%s2115_s23 + $0x50] sm:$0xff] %vm450_vm5, %v1497_v21  ;;  %v1486_v33 = vpop.f32.mrf.mxu0  ;;  %v776_v59 = vmul.f32 %v1497_v21, %v1497_v21  ;;  %v755_v44 = vsel %vm450_vm5, %v1497_v21, 0.0 }
 0x16c   : > { %v712_v32 = vpop.f32.mrf.mxu1  ;;  %454 = vst.msk [vmem:[%s2115_s23 + $0x18] sm:$0xff] %vm450_vm5, %v1486_v33  ;;  %v489_v51 = vsel %vm450_vm5, %v481_v62, 0.0  ;;  %v484_v63 = vmul.f32 %v1486_v33, %v1486_v33  ;;  %v464_v1 = vsel %vm450_vm5, %v1486_v33, 0.0 }
 0x16d   : > { %1409 = vst.msk [vmem:[%s2115_s23 + $0x40] sm:$0xff] %vm450_vm5, %v712_v32  ;;  %v422_v38 = vpop.f32.mrf.mxu0  ;;  %v774_v11 = vmul.f32 %v712_v32, %v712_v32  ;;  %v752_v10 = vsel %vm450_vm5, %v712_v32, 0.0  ;;  %v785_v9 = vsel %vm450_vm5, %v776_v59, 0.0 }
 0x16e   : > { %v1498_v35 = vpop.f32.mrf.mxu1  ;;  %452 = vst.msk [vmem:[%s2115_s23 + $0x8] sm:$0xff] %vm450_vm5, %v422_v38  ;;  %v482_v39 = vmul.f32 %v422_v38, %v422_v38  ;;  %v460_v56 = vsel %vm450_vm5, %v422_v38, 0.0  ;;  %v494_v41 = vsel %vm450_vm5, %v484_v63, 0.0 }
 0x16f   : > { %1412 = vst.msk [vmem:[%s2115_s23 + $0x58] sm:$0xff] %vm450_vm5, %v1498_v35  ;;  %v461_v14 = vadd.f32 %v460_v56, %v459_v43  ;;  %v782_v6 = vsel %vm450_vm5, %v774_v11, 0.0  ;;  %v757_v12 = vsel %vm450_vm5, %v1498_v35, 0.0  ;;  %v777_v20 = vmul.f32 %v1498_v35, %v1498_v35 }
 0x170   : > { %v715_v55 = vpop.f32.mrf.mxu1  ;;  %v490_v45 = vsel %vm450_vm5, %v482_v39, 0.0 }
 0x171   : > { %1410 = vst.msk [vmem:[%s2115_s23 + $0x48] sm:$0xff] %vm450_vm5, %v715_v55  ;;  %v775_v40 = vmul.f32 %v715_v55, %v715_v55  ;;  %v753_v48 = vsel %vm450_vm5, %v715_v55, 0.0  ;;  %v491_v52 = vadd.f32 %v490_v45, %v489_v51  ;;  %v463_v27 = vadd.f32 %v462_v57, %v461_v14 }
 0x172   : > { %v754_v58 = vadd.f32 %v753_v48, %v752_v10  ;;  %v787_v24 = vsel %vm450_vm5, %v777_v20, 0.0 }
 0x173   : > { %v783_v54 = vsel %vm450_vm5, %v775_v40, 0.0  ;;  %v493_v0 = vadd.f32 %v492_v3, %v491_v52  ;;  %v465_v15 = vadd.f32 %v464_v1, %v463_v27 }
 0x174   : > { %v784_v8 = vadd.f32 %v783_v54, %v782_v6  ;;  %v756_v2 = vadd.f32 %v755_v44, %v754_v58 }
 0x175   : > { %v495_v42 = vadd.f32 %v494_v41, %v493_v0 }
 0x176   : > { %v786_v18 = vadd.f32 %v785_v9, %v784_v8  ;;  %v758_v34 = vadd.f32 %v757_v12, %v756_v2 }
 0x178   : > { %v788_v32 = vadd.f32 %v787_v24, %v786_v18 }
 0x180   : > { %v1489_v60 = vpop.f32.mrf.mxu0 }
 0x181   : > { %457 = vst.msk [vmem:[%s2115_s23 + $0x30] sm:$0xff] %vm450_vm5, %v1489_v60  ;;  %v487_v36 = vmul.f32 %v1489_v60, %v1489_v60  ;;  %v470_v61 = vsel %vm450_vm5, %v1489_v60, 0.0 }
 0x182   : > { %v435_v49 = vpop.f32.mrf.mxu0  ;;  %v1501_v7 = vpop.f32.mrf.mxu1 }
 0x183   : > { %455 = vst.msk [vmem:[%s2115_s23 + $0x20] sm:$0xff] %vm450_vm5, %v435_v49  ;;  %v466_v5 = vsel %vm450_vm5, %v435_v49, 0.0  ;;  %v485_v53 = vmul.f32 %v435_v49, %v435_v49  ;;  %1415 = vst.msk [vmem:[%s2115_s23 + $0x70] sm:$0xff] %vm450_vm5, %v1501_v7  ;;  %v500_v55 = vsel %vm450_vm5, %v487_v36, 0.0  ;;  %v780_v39 = vmul.f32 %v1501_v7, %v1501_v7 }
 0x184   : > { %v1490_v16 = vpop.f32.mrf.mxu0  ;;  %v728_v17 = vpop.f32.mrf.mxu1  ;;  %v467_v25 = vadd.f32 %v466_v5, %v465_v15  ;;  %v763_v43 = vsel %vm450_vm5, %v1501_v7, 0.0 }
 0x185   : > { %v496_v19 = vsel %vm450_vm5, %v485_v53, 0.0  ;;  %458 = vst.msk [vmem:[%s2115_s23 + $0x38] sm:$0xff] %vm450_vm5, %v1490_v16  ;;  %1413 = vst.msk [vmem:[%s2115_s23 + $0x60] sm:$0xff] %vm450_vm5, %v728_v17  ;;  %v759_v4 = vsel %vm450_vm5, %v728_v17, 0.0  ;;  %v778_v22 = vmul.f32 %v728_v17, %v728_v17  ;;  %v488_v45 = vmul.f32 %v1490_v16, %v1490_v16 }
 0x186   : > { %v438_v23 = vpop.f32.mrf.mxu0  ;;  %v1502_v46 = vpop.f32.mrf.mxu1  ;;  %v497_v29 = vadd.f32 %v496_v19, %v495_v42  ;;  %v760_v13 = vadd.f32 %v759_v4, %v758_v34  ;;  %v793_v6 = vsel %vm450_vm5, %v780_v39, 0.0  ;;  %v472_v27 = vsel %vm450_vm5, %v1490_v16, 0.0 }
 0x187   : > { %456 = vst.msk [vmem:[%s2115_s23 + $0x28] sm:$0xff] %vm450_vm5, %v438_v23  ;;  %v468_v26 = vsel %vm450_vm5, %v438_v23, 0.0  ;;  %v486_v28 = vmul.f32 %v438_v23, %v438_v23  ;;  %1416 = vst.msk [vmem:[%s2115_s23 + $0x78] sm:$0xff] %vm450_vm5, %v1502_v46  ;;  %v789_v31 = vsel %vm450_vm5, %v778_v22, 0.0  ;;  %v765_v54 = vsel %vm450_vm5, %v1502_v46, 0.0 }
 0x188   : > { %v469_v37 = vadd.f32 %v468_v26, %v467_v25  ;;  %v2166_v30 = vpop.f32.mrf.mxu0  ;;  %v731_v21 = vpop.f32.mrf.mxu1  ;;  %v790_v11 = vadd.f32 %v789_v31, %v788_v32  ;;  %v781_v57 = vmul.f32 %v1502_v46, %v1502_v46  ;;  %v502_v8 = vsel %vm450_vm5, %v488_v45, 0.0 }
 0x189   : > { %v498_v47 = vsel %vm450_vm5, %v486_v28, 0.0  ;;  %1427 = vst.msk [vmem:[%s2115_s23 + $0x90] sm:$0xff] %vm450_vm5, %v2166_v30  ;;  %1414 = vst.msk [vmem:[%s2115_s23 + $0x68] sm:$0xff] %vm450_vm5, %v731_v21  ;;  %v761_v35 = vsel %vm450_vm5, %v731_v21, 0.0  ;;  %v779_v56 = vmul.f32 %v731_v21, %v731_v21  ;;  %v942_v9 = vmul.f32 %v2166_v30, %v2166_v30 }
 0x18a   : > { %v499_v33 = vadd.f32 %v498_v47, %v497_v29  ;;  %v878_v38 = vpop.f32.mrf.mxu0  ;;  %v762_v62 = vadd.f32 %v761_v35, %v760_v13  ;;  %v1521_v40 = vpop.f32.mrf.mxu1  ;;  %v471_v14 = vadd.f32 %v470_v61, %v469_v37  ;;  %v795_v7 = vsel %vm450_vm5, %v781_v57, 0.0 }
 0x18b   : > { %1425 = vst.msk [vmem:[%s2115_s23 + $0x80] sm:$0xff] %vm450_vm5, %v878_v38  ;;  %1443 = vst.msk [vmem:[%s2115_s23 + $0xd0] sm:$0xff] %vm450_vm5, %v1521_v40  ;;  %v791_v10 = vsel %vm450_vm5, %v779_v56, 0.0  ;;  %v940_v3 = vmul.f32 %v878_v38, %v878_v38  ;;  %v918_v15 = vsel %vm450_vm5, %v878_v38, 0.0  ;;  %v921_v42 = vsel %vm450_vm5, %v2166_v30, 0.0 }
 0x18c   : > { %v1510_v48 = vpop.f32.mrf.mxu0  ;;  %v501_v50 = vadd.f32 %v500_v55, %v499_v33  ;;  %v764_v51 = vadd.f32 %v763_v43, %v762_v62  ;;  %v1045_v52 = vpop.f32.mrf.mxu1  ;;  %v792_v58 = vadd.f32 %v791_v10, %v790_v11  ;;  %v473_v44 = vadd.f32 %v472_v27, %v471_v14 }
 0x18d   : > { %1428 = vst.msk [vmem:[%s2115_s23 + $0x98] sm:$0xff] %vm450_vm5, %v1510_v48  ;;  %1441 = vst.msk [vmem:[%s2115_s23 + $0xc0] sm:$0xff] %vm450_vm5, %v1045_v52  ;;  %v948_v20 = vsel %vm450_vm5, %v940_v3, 0.0  ;;  %v1109_v36 = vmul.f32 %v1521_v40, %v1521_v40  ;;  %v951_v28 = vsel %vm450_vm5, %v942_v9, 0.0  ;;  %v943_v29 = vmul.f32 %v1510_v48, %v1510_v48 }
 0x18e   : > { %v881_v59 = vpop.f32.mrf.mxu0  ;;  %v766_v60 = vadd.f32 %v765_v54, %v764_v51  ;;  %v2194_v63 = vpop.f32.mrf.mxu1  ;;  %v794_v0 = vadd.f32 %v793_v6, %v792_v58  ;;  %v503_v1 = vadd.f32 %v502_v8, %v501_v50  ;;  %v474_v25 = vrot.slane %v473_v44, 4 }
 0x18f   : > { %1426 = vst.msk [vmem:[%s2115_s23 + $0x88] sm:$0xff] %vm450_vm5, %v881_v59  ;;  %1444 = vst.msk [vmem:[%s2115_s23 + $0xd8] sm:$0xff] %vm450_vm5, %v2194_v63  ;;  %v919_v2 = vsel %vm450_vm5, %v881_v59, 0.0  ;;  %v941_v5 = vmul.f32 %v881_v59, %v881_v59  ;;  %v1107_v37 = vmul.f32 %v1045_v52, %v1045_v52  ;;  %v1088_v13 = vsel %vm450_vm5, %v1521_v40, 0.0 }
 0x190   : > { %v2200_v49 = vpop.f32.mrf.mxu0  ;;  %v1048_v53 = vpop.f32.mrf.mxu1  ;;  %v767_v12 = vrot.slane %v766_v60, 4  ;;  %v796_v41 = vadd.f32 %v795_v7, %v794_v0  ;;  %v920_v18 = vadd.f32 %v919_v2, %v918_v15  ;;  %v504_v23 = vrot.slane %v503_v1, 4 }
 0x191   : > { %1431 = vst.msk [vmem:[%s2115_s23 + $0xb0] sm:$0xff] %vm450_vm5, %v2200_v49  ;;  %1442 = vst.msk [vmem:[%s2115_s23 + $0xc8] sm:$0xff] %vm450_vm5, %v1048_v53  ;;  %v949_v19 = vsel %vm450_vm5, %v941_v5, 0.0  ;;  %v1085_v31 = vsel %vm450_vm5, %v1045_v52, 0.0  ;;  %v1086_v47 = vsel %vm450_vm5, %v1048_v53, 0.0  ;;  %v2236_v61 = vadd.f32 %v474_v25, %v473_v44 }
 0x192   : > { %v894_v16 = vpop.f32.mrf.mxu0  ;;  %v2216_v17 = vpop.f32.mrf.mxu1  ;;  %v950_v4 = vadd.f32 %v949_v19, %v948_v20  ;;  %v922_v34 = vadd.f32 %v921_v42, %v920_v18  ;;  %v768_v46 = vadd.f32 %v767_v12, %v766_v60  ;;  %v797_v24 = vrot.slane %v796_v41, 4 }
 0x193   : > { %1429 = vst.msk [vmem:[%s2115_s23 + $0xa0] sm:$0xff] %vm450_vm5, %v894_v16  ;;  %1447 = vst.msk [vmem:[%s2115_s23 + $0xf0] sm:$0xff] %vm450_vm5, %v2216_v17  ;;  %v923_v32 = vsel %vm450_vm5, %v1510_v48, 0.0  ;;  %v1087_v35 = vadd.f32 %v1086_v47, %v1085_v31  ;;  %v2241_v38 = vadd.f32 %v504_v23, %v503_v1  ;;  %v1118_v55 = vsel %vm450_vm5, %v1109_v36, 0.0 }
 0x194   : > { %v2223_v22 = vpop.f32.mrf.mxu0  ;;  %v1061_v26 = vpop.f32.mrf.mxu1  ;;  %v952_v33 = vadd.f32 %v951_v28, %v950_v4  ;;  %v1108_v39 = vmul.f32 %v1048_v53, %v1048_v53  ;;  %v924_v62 = vadd.f32 %v923_v32, %v922_v34  ;;  %v769_v40 = vrot.slane %v768_v46, 2 }
 0x195   : > { %1432 = vst.msk [vmem:[%s2115_s23 + $0xb8] sm:$0xff] %vm450_vm5, %v2223_v22  ;;  %1445 = vst.msk [vmem:[%s2115_s23 + $0xe0] sm:$0xff] %vm450_vm5, %v1061_v26  ;;  %v953_v43 = vsel %vm450_vm5, %v943_v29, 0.0  ;;  %v1115_v45 = vsel %vm450_vm5, %v1107_v37, 0.0  ;;  %v1110_v11 = vmul.f32 %v2194_v63, %v2194_v63  ;;  %v798_v14 = vadd.f32 %v797_v24, %v796_v41 }
 0x196   : > { %v897_v30 = vpop.f32.mrf.mxu0  ;;  %v1526_v21 = vpop.f32.mrf.mxu1  ;;  %v1089_v48 = vadd.f32 %v1088_v13, %v1087_v35  ;;  %v1116_v50 = vsel %vm450_vm5, %v1108_v39, 0.0  ;;  %v944_v51 = vmul.f32 %v894_v16, %v894_v16  ;;  %v476_v10 = vrot.slane %v2236_v61, 2 }
 0x197   : > { %1430 = vst.msk [vmem:[%s2115_s23 + $0xa8] sm:$0xff] %vm450_vm5, %v897_v30  ;;  %1448 = vst.msk [vmem:[%s2115_s23 + $0xf8] sm:$0xff] %vm450_vm5, %v1526_v21  ;;  %v1117_v52 = vadd.f32 %v1116_v50, %v1115_v45  ;;  %v925_v54 = vsel %vm450_vm5, %v894_v16, 0.0  ;;  %v954_v57 = vadd.f32 %v953_v43, %v952_v33  ;;  %v506_v58 = vrot.slane %v2241_v38, 2 }
 0x198   : > { %v1064_v56 = vpop.f32.mrf.mxu1  ;;  %v1090_v59 = vsel %vm450_vm5, %v2194_v63, 0.0  ;;  %v929_v6 = vsel %vm450_vm5, %v2200_v49, 0.0  ;;  %v926_v27 = vadd.f32 %v925_v54, %v924_v62  ;;  %v770_v60 = vadd.f32 %v769_v40, %v768_v46 }
 0x199   : > { %1446 = vst.msk [vmem:[%s2115_s23 + $0xe8] sm:$0xff] %vm450_vm5, %v1064_v56  ;;  %v1120_v3 = vsel %vm450_vm5, %v1110_v11, 0.0  ;;  %v946_v8 = vmul.f32 %v2200_v49, %v2200_v49  ;;  %v1119_v44 = vadd.f32 %v1118_v55, %v1117_v52  ;;  %v799_v0 = vrot.slane %v798_v14, 2 }
 0x19a   : > { %v955_v1 = vsel %vm450_vm5, %v944_v51, 0.0  ;;  %v1091_v2 = vadd.f32 %v1090_v59, %v1089_v48  ;;  %v1111_v5 = vmul.f32 %v1061_v26, %v1061_v26  ;;  %v1092_v7 = vsel %vm450_vm5, %v1061_v26, 0.0 }
 0x19b   : > { %v956_v53 = vadd.f32 %v955_v1, %v954_v57  ;;  %v1121_v63 = vadd.f32 %v1120_v3, %v1119_v44  ;;  %v927_v9 = vsel %vm450_vm5, %v897_v30, 0.0  ;;  %v945_v41 = vmul.f32 %v897_v30, %v897_v30 }
 0x19c   : > { %v1093_v12 = vadd.f32 %v1092_v7, %v1091_v2  ;;  %v1122_v15 = vsel %vm450_vm5, %v1111_v5, 0.0  ;;  %v928_v16 = vadd.f32 %v927_v9, %v926_v27  ;;  %v1113_v49 = vmul.f32 %v2216_v17, %v2216_v17 }
 0x19d   : > { %v947_v20 = vmul.f32 %v2223_v22, %v2223_v22  ;;  %v1123_v18 = vadd.f32 %v1122_v15, %v1121_v63  ;;  %v1094_v19 = vsel %vm450_vm5, %v1064_v56, 0.0  ;;  %v957_v42 = vsel %vm450_vm5, %v945_v41, 0.0 }
 0x19e   : > { %v930_v25 = vadd.f32 %v929_v6, %v928_v16  ;;  %v1095_v4 = vadd.f32 %v1094_v19, %v1093_v12  ;;  %v1112_v23 = vmul.f32 %v1064_v56, %v1064_v56  ;;  %v959_v36 = vsel %vm450_vm5, %v946_v8, 0.0 }
 0x19f   : > { %v1096_v34 = vsel %vm450_vm5, %v2216_v17, 0.0  ;;  %v931_v26 = vsel %vm450_vm5, %v2223_v22, 0.0  ;;  %v958_v28 = vadd.f32 %v957_v42, %v956_v53  ;;  %v1114_v29 = vmul.f32 %v1526_v21, %v1526_v21  ;;  %v1247_v42 = vld [vmem:[%s2115_s23 + $0x8] sm:$0xff] (%p1762_p4) }
 0x1a0   : > { %v932_v46 = vadd.f32 %v931_v26, %v930_v25  ;;  %v1097_v37 = vadd.f32 %v1096_v34, %v1095_v4  ;;  %v1124_v30 = vsel %vm450_vm5, %v1112_v23, 0.0  ;;  %v800_v24 = vadd.f32 %v799_v0, %v798_v14  ;;  %v1245_v25 = vld [vmem:[%s2115_s23] sm:$0xff] (%p1762_p4)  ;;  %v1249_v4 = vld [vmem:[%s2115_s23 + $0x10] sm:$0xff] (%p1762_p4)  ;;  %v1251_v23 = vld [vmem:[%s2115_s23 + $0x18] sm:$0xff] (%p1762_p4)  ;;  %1248 = vst [vmem:[%s2296_s5 + $0x8] sm:$0xff] (%p1762_p4), %v1247_v42 }
 0x1a1   : > { %v960_v13 = vadd.f32 %v959_v36, %v958_v28  ;;  %v1098_v31 = vsel %vm450_vm5, %v1526_v21, 0.0  ;;  %v1125_v47 = vadd.f32 %v1124_v30, %v1123_v18  ;;  %v1126_v32 = vsel %vm450_vm5, %v1113_v49, 0.0  ;;  %v1253_v36 = vld [vmem:[%s2115_s23 + $0x20] sm:$0xff] (%p1762_p4)  ;;  %v1255_v34 = vld [vmem:[%s2115_s23 + $0x28] sm:$0xff] (%p1762_p4)  ;;  %1246 = vst [vmem:[%s2296_s5] sm:$0xff] (%p1762_p4), %v1245_v25  ;;  %1250 = vst [vmem:[%s2296_s5 + $0x10] sm:$0xff] (%p1762_p4), %v1249_v4 }
 0x1a2   : > { %v961_v33 = vsel %vm450_vm5, %v947_v20, 0.0  ;;  %v933_v35 = vrot.slane %v932_v46, 4  ;;  %v1099_v17 = vadd.f32 %v1098_v31, %v1097_v37  ;;  %v477_v55 = vadd.f32 %v476_v10, %v2236_v61  ;;  %1252 = vst [vmem:[%s2296_s5 + $0x18] sm:$0xff] (%p1762_p4), %v1251_v23  ;;  %1254 = vst [vmem:[%s2296_s5 + $0x20] sm:$0xff] (%p1762_p4), %v1253_v36  ;;  %v1257_v26 = vld [vmem:[%s2115_s23 + $0x30] sm:$0xff] (%p1762_p4)  ;;  %v1259_v28 = vld [vmem:[%s2115_s23 + $0x38] sm:$0xff] (%p1762_p4) }
 0x1a3   : > { %v962_v22 = vadd.f32 %v961_v33, %v960_v13  ;;  %v1127_v39 = vadd.f32 %v1126_v32, %v1125_v47  ;;  %v507_v62 = vadd.f32 %v506_v58, %v2241_v38  ;;  %v1128_v40 = vsel %vm450_vm5, %v1114_v29, 0.0  ;;  %1256 = vst [vmem:[%s2296_s5 + $0x28] sm:$0xff] (%p1762_p4), %v1255_v34  ;;  %1258 = vst [vmem:[%s2296_s5 + $0x30] sm:$0xff] (%p1762_p4), %v1257_v26  ;;  %v1263_v29 = vld [vmem:[%s2115_s23 + $0x48] sm:$0xff] (%p1762_p4)  ;;  %v1265_v37 = vld [vmem:[%s2115_s23 + $0x50] sm:$0xff] (%p1762_p4) }
 0x1a4   : > { %v934_v56 = vadd.f32 %v933_v35, %v932_v46  ;;  %v1100_v43 = vrot.slane %v1099_v17, 4  ;;  %v771_v45 = vrot.slane %v770_v60, 1  ;;  %v801_v14 = vrot.slane %v800_v24, 1  ;;  %v1261_v46 = vld [vmem:[%s2115_s23 + $0x40] sm:$0xff] (%p1762_p4)  ;;  %1260 = vst [vmem:[%s2296_s5 + $0x38] sm:$0xff] (%p1762_p4), %v1259_v28  ;;  %v1267_v30 = vld [vmem:[%s2115_s23 + $0x58] sm:$0xff] (%p1762_p4) }
 0x1a5   : > { %v963_v11 = vrot.slane %v962_v22, 4  ;;  %v1129_v21 = vadd.f32 %v1128_v40, %v1127_v39  ;;  %v478_v51 = vrot.slane %v477_v55, 1  ;;  %v508_v57 = vrot.slane %v507_v62, 1  ;;  %1262 = vst [vmem:[%s2296_s5 + $0x80] sm:$0xff] (%p1762_p4), %v1261_v46  ;;  %1264 = vst [vmem:[%s2296_s5 + $0x88] sm:$0xff] (%p1762_p4), %v1263_v29  ;;  %v1271_v13 = vld [vmem:[%s2115_s23 + $0x68] sm:$0xff] (%p1762_p4) }
 0x1a6   : > { %v935_v48 = vrot.slane %v934_v56, 2  ;;  %v1101_v50 = vadd.f32 %v1100_v43, %v1099_v17  ;;  %v772_v10 = vadd.f32 %v771_v45, %v770_v60  ;;  %v802_v38 = vadd.f32 %v801_v14, %v800_v24  ;;  %1266 = vst [vmem:[%s2296_s5 + $0x90] sm:$0xff] (%p1762_p4), %v1265_v37  ;;  %1268 = vst [vmem:[%s2296_s5 + $0x98] sm:$0xff] (%p1762_p4), %v1267_v30  ;;  %v1269_v24 = vld [vmem:[%s2115_s23 + $0x60] sm:$0xff] (%p1762_p4)  ;;  %v1273_v31 = vld [vmem:[%s2115_s23 + $0x70] sm:$0xff] (%p1762_p4) }
 0x1a7   : > { %v964_v52 = vadd.f32 %v963_v11, %v962_v22  ;;  %v1130_v54 = vrot.slane %v1129_v21, 4  ;;  %v479_v8 = vadd.f32 %v478_v51, %v477_v55  ;;  %v509_v1 = vadd.f32 %v508_v57, %v507_v62  ;;  %1270 = vst [vmem:[%s2296_s5 + $0xa0] sm:$0xff] (%p1762_p4), %v1269_v24  ;;  %1272 = vst [vmem:[%s2296_s5 + $0xa8] sm:$0xff] (%p1762_p4), %v1271_v13  ;;  %v1275_v47 = vld [vmem:[%s2115_s23 + $0x78] sm:$0xff] (%p1762_p4)  ;;  %v1277_v32 = vld [vmem:[%s2115_s23 + $0x80] sm:$0xff] (%p1762_p4) }
 0x1a8   : > { %v936_v59 = vadd.f32 %v935_v48, %v934_v56  ;;  %v1102_v61 = vrot.slane %v1101_v50, 2  ;;  %1274 = vst [vmem:[%s2296_s5 + $0xb0] sm:$0xff] (%p1762_p4), %v1273_v31  ;;  %v1279_v33 = vld [vmem:[%s2115_s23 + $0x88] sm:$0xff] (%p1762_p4)  ;;  %1276 = vst [vmem:[%s2296_s5 + $0xb8] sm:$0xff] (%p1762_p4), %v1275_v47  ;;  %v1281_v35 = vld [vmem:[%s2115_s23 + $0x90] sm:$0xff] (%p1762_p4) }
 0x1a9   : > { %v965_v6 = vrot.slane %v964_v52, 2  ;;  %v1131_v27 = vadd.f32 %v1130_v54, %v1129_v21  ;;  %v773_v53 = vadd.f32 %v772_v10, %v479_v8  ;;  %v803_v9 = vadd.f32 %v802_v38, %v509_v1  ;;  %1278 = vst [vmem:[%s2296_s5 + $0x100] sm:$0xff] (%p1762_p4), %v1277_v32  ;;  %1280 = vst [vmem:[%s2296_s5 + $0x108] sm:$0xff] (%p1762_p4), %v1279_v33  ;;  %v1283_v17 = vld [vmem:[%s2115_s23 + $0x98] sm:$0xff] (%p1762_p4)  ;;  %v1285_v55 = vld [vmem:[%s2115_s23 + $0xa0] sm:$0xff] (%p1762_p4) }
 0x1aa   : > { %v937_v58 = vrot.slane %v936_v59, 1  ;;  %v1103_v3 = vadd.f32 %v1102_v61, %v1101_v50  ;;  %1282 = vst [vmem:[%s2296_s5 + $0x110] sm:$0xff] (%p1762_p4), %v1281_v35  ;;  %1284 = vst [vmem:[%s2296_s5 + $0x118] sm:$0xff] (%p1762_p4), %v1283_v17  ;;  %v1287_v22 = vld [vmem:[%s2115_s23 + $0xa8] sm:$0xff] (%p1762_p4)  ;;  %v1289_v39 = vld [vmem:[%s2115_s23 + $0xb0] sm:$0xff] (%p1762_p4) }
 0x1ab   : > { %v966_v44 = vadd.f32 %v965_v6, %v964_v52  ;;  %v1132_v0 = vrot.slane %v1131_v27, 2  ;;  %1286 = vst [vmem:[%s2296_s5 + $0x120] sm:$0xff] (%p1762_p4), %v1285_v55  ;;  %v1291_v62 = vld [vmem:[%s2115_s23 + $0xb8] sm:$0xff] (%p1762_p4)  ;;  %1288 = vst [vmem:[%s2296_s5 + $0x128] sm:$0xff] (%p1762_p4), %v1287_v22  ;;  %v1293_v56 = vld [vmem:[%s2115_s23 + $0xc0] sm:$0xff] (%p1762_p4) }
 0x1ac   : > { %v938_v2 = vadd.f32 %v937_v58, %v936_v59  ;;  %v1104_v5 = vrot.slane %v1103_v3, 1  ;;  %1290 = vst [vmem:[%s2296_s5 + $0x130] sm:$0xff] (%p1762_p4), %v1289_v39  ;;  %1292 = vst [vmem:[%s2296_s5 + $0x138] sm:$0xff] (%p1762_p4), %v1291_v62  ;;  %v1295_v40 = vld [vmem:[%s2115_s23 + $0xc8] sm:$0xff] (%p1762_p4)  ;;  %v1297_v43 = vld [vmem:[%s2115_s23 + $0xd0] sm:$0xff] (%p1762_p4) }
 0x1ad   : > { %v967_v7 = vrot.slane %v966_v44, 1  ;;  %v1133_v63 = vadd.f32 %v1132_v0, %v1131_v27  ;;  %1294 = vst [vmem:[%s2296_s5 + $0x180] sm:$0xff] (%p1762_p4), %v1293_v56  ;;  %1296 = vst [vmem:[%s2296_s5 + $0x188] sm:$0xff] (%p1762_p4), %v1295_v40  ;;  %v1299_v45 = vld [vmem:[%s2115_s23 + $0xd8] sm:$0xff] (%p1762_p4)  ;;  %v1301_v11 = vld [vmem:[%s2115_s23 + $0xe0] sm:$0xff] (%p1762_p4) }
 0x1ae   : > { %v939_v12 = vadd.f32 %v938_v2, %v773_v53  ;;  %v1105_v16 = vadd.f32 %v1104_v5, %v1103_v3  ;;  %1298 = vst [vmem:[%s2296_s5 + $0x190] sm:$0xff] (%p1762_p4), %v1297_v43  ;;  %v1303_v21 = vld [vmem:[%s2115_s23 + $0xe8] sm:$0xff] (%p1762_p4)  ;;  %1300 = vst [vmem:[%s2296_s5 + $0x198] sm:$0xff] (%p1762_p4), %v1299_v45  ;;  %v1305_v14 = vld [vmem:[%s2115_s23 + $0xf0] sm:$0xff] (%p1762_p4) }
 0x1af   : > { %v968_v15 = vadd.f32 %v967_v7, %v966_v44  ;;  %v1134_v60 = vrot.slane %v1133_v63, 1  ;;  %1302 = vst [vmem:[%s2296_s5 + $0x1a0] sm:$0xff] (%p1762_p4), %v1301_v11  ;;  %1304 = vst [vmem:[%s2296_s5 + $0x1a8] sm:$0xff] (%p1762_p4), %v1303_v21  ;;  %v1307_v48 = vld [vmem:[%s2115_s23 + $0xf8] sm:$0xff] (%p1762_p4) }
 0x1b0   : > { %v1106_v20 = vadd.f32 %v1105_v16, %v939_v12  ;;  %1306 = vst [vmem:[%s2296_s5 + $0x1b0] sm:$0xff] (%p1762_p4), %v1305_v14  ;;  %1308 = vst [vmem:[%s2296_s5 + $0x1b8] sm:$0xff] (%p1762_p4), %v1307_v48 }
 0x1b1   : > { %v969_v41 = vadd.f32 %v968_v15, %v803_v9  ;;  %v1135_v49 = vadd.f32 %v1134_v60, %v1133_v63 }
 0x1b2   : > { %1151 = sbr.rel (!%p1762_p4) target bundleno = 439 (0x1b7), region = 32 }
 0x1b3   : > { %v1136_v18 = vadd.f32 %v1135_v49, %v969_v41 }
 0x1b5   : > { %v1138_v19 = vsel %vm1137_vm6, %v1106_v20, %v1136_v18 }
 0x1b6   : > { %1140 = vst.msk [vmem:[%s175_s29] sm:$0x3] %vm1139_vm7, %v1138_v19 }
 0x1b7 PF: > { %p11_p8 = scmp.ge.s32.totalorder %s1752_s16, 4   ;;  %s2374_s12 = smov %s1708_s13 }
 0x1b8   : > { %s2375_s13 = smov %s1760_s19  ;;  %s2376_s14 = smov %s1752_s16 }
 0x1b9   :  { %13 = sbr.rel (!%p11_p8) target bundleno = 2 (0x2), region = 114 }

</bundles_post_ra>
